<compile_context>
chip_gen: v5e
topology: v5e:2x2
jax: 0.10.0
libtpu: 0.0.40
codegen_flags: <defaults>
</compile_context>

<pallas_src>
import functools

import jax
import jax.numpy as jnp
from jax import lax
from jax.experimental import pallas as pl
from jax.experimental.pallas import tpu as pltpu


def directivity_kernel(tok_ref, table_ref, gbias_ref, rhs_ref,
                       b1_ref, w2_ref, b2_ref, out_ref,
                       *, seq_len, hidden_size, vocab_size, num_classes,
                       block_b):
    T, H, V, C, Bb = seq_len, hidden_size, vocab_size, num_classes, block_b
    f32 = jnp.float32
    bf16 = jnp.bfloat16

    # --- embedding + input projections for BOTH directions: one matmul ------
    # tok rows are ordered t*Bb + b (arranged in the wrapper); Bb is a multiple
    # of 8 so every per-timestep row block below is sublane-aligned.
    tok = tok_ref[...]                                         # (T*Bb, 1) int32
    iota = lax.broadcasted_iota(jnp.int32, (T * Bb, V), 1)
    onehot = (iota == tok).astype(f32)                         # (T*Bb, V)
    # table = [emb @ W_ih_f^T | emb @ W_ih_b^T] (g columns pre-scaled by 2),
    # kept f32 so the activation values are not rounded to bf16.
    xg = jnp.dot(onehot, table_ref[...], preferred_element_type=f32)
    xg = xg + gbias_ref[...]                                   # (T*Bb, 8H)

    # --- LSTM cell (PyTorch gate order i, f, g, o); gate math in f32 --------
    def cell(gates, c):
        sig = jax.nn.sigmoid(gates)           # single EUP pass over (Bb, 4H)
        i = sig[:, 0 * H:1 * H]
        f = sig[:, 1 * H:2 * H]
        g = 2.0 * sig[:, 2 * H:3 * H] - 1.0   # tanh(x) = 2*sigmoid(2x) - 1
        o = sig[:, 3 * H:4 * H]
        c_new = f * c + i * g
        h_new = o * jnp.tanh(c_new)
        return h_new, c_new

    h_f = jnp.zeros((Bb, H), f32)
    c_f = jnp.zeros((Bb, H), f32)
    h_b = jnp.zeros((Bb, H), f32)
    c_b = jnp.zeros((Bb, H), f32)
    d1 = jnp.zeros((Bb, H), f32)               # fused Flatten+Linear1 accumulator

    # Iteration s: one fused MXU push consuming the hidden states of step s-1
    # (first 8H result columns = gate pre-activations for step s, last H
    # columns = Linear1 contribution of step s-1), then advance both
    # recurrences.  Fwd and bwd chains stay interleaved in lock-step.
    fused = None
    for s in range(T + 1):
        if s > 0:
            lhs = jnp.concatenate([h_f, h_b], axis=1).astype(bf16)   # (Bb, 2H)
            fused = jnp.dot(lhs, rhs_ref[s - 1],
                            preferred_element_type=f32)              # (Bb, 9H)
            d1 = d1 + fused[:, 8 * H:]
        if s < T:
            tb = T - 1 - s
            gates_f = xg[s * Bb:(s + 1) * Bb, 0:4 * H]
            gates_b = xg[tb * Bb:(tb + 1) * Bb, 4 * H:8 * H]
            if s > 0:
                gates_f = gates_f + fused[:, 0:4 * H]
                gates_b = gates_b + fused[:, 4 * H:8 * H]
            h_f, c_f = cell(gates_f, c_f)
            h_b, c_b = cell(gates_b, c_b)

    d1 = jnp.maximum(d1 + b1_ref[...], 0.0)                    # ReLU(Linear1)

    if C == 1:
        # (Bb,H)@(H,1) would be a 1/128-lane MXU push; VPU mul + lane reduce.
        logits = jnp.sum(d1 * w2_ref[...], axis=-1, keepdims=True) + b2_ref[...]
    else:
        logits = jnp.dot(d1.astype(bf16), w2_ref[...],
                         preferred_element_type=f32) + b2_ref[...]
    out_ref[...] = jax.nn.sigmoid(logits).astype(out_ref.dtype)


def directivity_forward(tokens, params, *, seq_len, hidden_size, vocab_size,
                        num_classes):
    f32 = jnp.float32
    bf16 = jnp.bfloat16
    B = tokens.shape[0]
    T, H, V, C = seq_len, hidden_size, vocab_size, num_classes

    # --- batch tiling policy: sublane-aligned block, grow before splitting ---
    block_b = min(256, ((B + 7) // 8) * 8)
    Bp = ((B + block_b - 1) // block_b) * block_b
    nb = Bp // block_b

    # --- wrapper-side weight folding (input independent) --------------------
    # g-gate pre-activations pre-scaled by 2 so the kernel recovers tanh via
    # 2*sigmoid(2x)-1 without a second EUP pass per cell.
    gate_scale = jnp.ones((8 * H,), f32)
    gate_scale = gate_scale.at[2 * H:3 * H].set(2.0).at[6 * H:7 * H].set(2.0)

    emb = params["emb"].astype(f32)
    table = (jnp.concatenate(
        [emb @ params["w_ih_f"].astype(f32).T,
         emb @ params["w_ih_b"].astype(f32).T], axis=1) * gate_scale)   # (V,8H) f32
    gbias = (jnp.concatenate(
        [params["b_ih_f"] + params["b_hh_f"],
         params["b_ih_b"] + params["b_hh_b"]]).astype(f32)
        * gate_scale).reshape(1, 8 * H)

    whh_f = params["w_hh_f"].astype(f32).T                      # (H, 4H)
    whh_b = params["w_hh_b"].astype(f32).T
    zero_blk = jnp.zeros((H, 4 * H), f32)
    whh_blk = (jnp.concatenate(
        [jnp.concatenate([whh_f, zero_blk], axis=1),
         jnp.concatenate([zero_blk, whh_b], axis=1)], axis=0)
        * gate_scale)                                           # (2H, 8H)

    w1t = params["w1"].astype(f32).T.reshape(T, 2 * H, H)       # (T, 2H, H)
    # head slab used at loop iteration s = k+1 pairs fwd step k with bwd step T-1-k
    head = jnp.stack(
        [jnp.concatenate([w1t[k, :H, :], w1t[T - 1 - k, H:, :]], axis=0)
         for k in range(T)], axis=0)                            # (T, 2H, H)
    rhs = jnp.concatenate(
        [jnp.broadcast_to(whh_blk[None], (T, 2 * H, 8 * H)), head],
        axis=2).astype(bf16)                                    # (T, 2H, 9H)

    b1 = params["b1"].reshape(1, H).astype(f32)
    b2 = params["b2"].reshape(1, C).astype(f32)
    if C == 1:
        w2 = params["w2"].reshape(1, H).astype(f32)             # VPU path
        w2_shape = (1, H)
    else:
        w2 = params["w2"].astype(f32).T.astype(bf16)            # (H, C) MXU path
        w2_shape = (H, C)

    # --- tokens: pad batch (token id 0 for pad rows), rows as t*block_b + b --
    # NOTE: out-of-range token ids map to an all-zero embedding row here,
    # whereas torch.nn.Embedding would raise; inputs must be in [0, V).
    tok = tokens.astype(jnp.int32)
    if Bp != B:
        tok = jnp.concatenate([tok, jnp.zeros((Bp - B, T), jnp.int32)], axis=0)
    tok = tok.reshape(nb, block_b, T)
    tok = jnp.transpose(tok, (0, 2, 1)).reshape(nb * T * block_b, 1)

    kernel = functools.partial(
        directivity_kernel, seq_len=T, hidden_size=H, vocab_size=V,
        num_classes=C, block_b=block_b)

    def rep2(shape):   # weights resident across the batch grid
        return pl.BlockSpec(shape, lambda i: (0, 0))

    out = pl.pallas_call(
        kernel,
        out_shape=jax.ShapeDtypeStruct((Bp, C), f32),
        grid=(nb,),
        in_specs=[
            pl.BlockSpec((T * block_b, 1), lambda i: (i, 0)),        # tokens
            rep2((V, 8 * H)),                                        # gate table
            rep2((1, 8 * H)),                                        # combined biases
            pl.BlockSpec((T, 2 * H, 9 * H), lambda i: (0, 0, 0)),    # per-step RHS
            rep2((1, H)),                                            # b1
            rep2(w2_shape),                                          # w2
            rep2((1, C)),                                            # b2
        ],
        out_specs=pl.BlockSpec((block_b, C), lambda i: (i, 0)),
        compiler_params=pltpu.CompilerParams(
            dimension_semantics=("parallel",)),
    )(tok, table, gbias, rhs, b1, w2, b2)
    return out[:B]


def init_params(key, vocab_size, embed_size, hidden_size, num_classes,
                seq_len):
    """Deterministic synthetic init (shapes match torch.nn module params)."""
    H, E = hidden_size, embed_size
    mid = seq_len * 2 * H
    ks = jax.random.split(key, 13)
    s = 1.0 / jnp.sqrt(H)
    u = lambda k, shape: jax.random.uniform(k, shape, jnp.float32, -s, s)
    return {
        "emb":    jax.random.normal(ks[0], (vocab_size, E), jnp.float32),
        # forward-direction LSTM
        "w_ih_f": u(ks[1], (4 * H, E)),
        "w_hh_f": u(ks[2], (4 * H, H)),
        "b_ih_f": u(ks[3], (4 * H,)),
        "b_hh_f": u(ks[4], (4 * H,)),
        # reverse-direction LSTM
        "w_ih_b": u(ks[5], (4 * H, E)),
        "w_hh_b": u(ks[6], (4 * H, H)),
        "b_ih_b": u(ks[7], (4 * H,)),
        "b_hh_b": u(ks[8], (4 * H,)),
        # dense head
        "w1": u(ks[9], (H, mid)),
        "b1": u(ks[10], (H,)),
        "w2": u(ks[11], (num_classes, H)),
        "b2": u(ks[12], (num_classes,)),
    }


if __name__ == "__main__":
    vocab_size, embed_size, hidden_size = 32, 16, 32
    num_classes, seq_len, batch = 1, 8, 2

    key = jax.random.PRNGKey(0)
    k_tok, k_par = jax.random.split(key)
    tokens = jax.random.randint(k_tok, (batch, seq_len), 0, vocab_size,
                                dtype=jnp.int32)
    params = init_params(k_par, vocab_size, embed_size, hidden_size,
                         num_classes, seq_len)

    out = directivity_forward(
        tokens, params,
        seq_len=seq_len, hidden_size=hidden_size,
        vocab_size=vocab_size, num_classes=num_classes)
    out = jax.block_until_ready(out)

    assert out.shape == (batch, num_classes)
    assert bool(jnp.all(jnp.isfinite(out)))
    assert bool(jnp.all((out >= 0.0) & (out <= 1.0)))
    print("KERNEL_OK")
</pallas_src>

<mosaic_0001>
module attributes {stable_mosaic.version = 11 : i64} {
  func.func @directivity_kernel(%arg0: i32, %arg1: memref<64x1xi32, #tpu.memory_space<vmem>>, %arg2: memref<32x256xf32, #tpu.memory_space<vmem>>, %arg3: memref<1x256xf32, #tpu.memory_space<vmem>>, %arg4: memref<8x64x288xbf16, #tpu.memory_space<vmem>>, %arg5: memref<1x32xf32, #tpu.memory_space<vmem>>, %arg6: memref<1x32xf32, #tpu.memory_space<vmem>>, %arg7: memref<1x1xf32, #tpu.memory_space<vmem>>, %arg8: memref<8x1xf32, #tpu.memory_space<vmem>>) attributes {dimension_semantics = [#tpu.dimension_semantics<parallel>], iteration_bounds = array<i64: 1>, scalar_prefetch = 0 : i64, scratch_operands = 0 : i64, tpu.core_type = #tpu.core_type<tc>, window_params = [{transform_indices = @transform_0, window_bounds = array<i64: 64, 1>}, {pipeline_mode = #tpu.pipeline_mode<synchronous>, transform_indices = @transform_1, window_bounds = array<i64: 32, 256>}, {pipeline_mode = #tpu.pipeline_mode<synchronous>, transform_indices = @transform_2, window_bounds = array<i64: 1, 256>}, {pipeline_mode = #tpu.pipeline_mode<synchronous>, transform_indices = @transform_3, window_bounds = array<i64: 8, 64, 288>}, {pipeline_mode = #tpu.pipeline_mode<synchronous>, transform_indices = @transform_4, window_bounds = array<i64: 1, 32>}, {pipeline_mode = #tpu.pipeline_mode<synchronous>, transform_indices = @transform_5, window_bounds = array<i64: 1, 32>}, {pipeline_mode = #tpu.pipeline_mode<synchronous>, transform_indices = @transform_6, window_bounds = array<i64: 1, 1>}, {transform_indices = @transform_7, window_bounds = array<i64: 8, 1>}]} {
    %c0 = arith.constant 0 : index
    %c0_0 = arith.constant 0 : index
    %0 = vector.load %arg1[%c0, %c0_0] : memref<64x1xi32, #tpu.memory_space<vmem>>, vector<64x1xi32>
    %1 = tpu.iota {dimensions = array<i32: 1>} : vector<64x32xi32>
    %2 = vector.broadcast %0 : vector<64x1xi32> to vector<64x32xi32>
    %3 = arith.cmpi eq, %1, %2 : vector<64x32xi32>
    %4 = arith.extui %3 : vector<64x32xi1> to vector<64x32xi32>
    %5 = arith.sitofp %4 : vector<64x32xi32> to vector<64x32xf32>
    %c0_1 = arith.constant 0 : index
    %c0_2 = arith.constant 0 : index
    %6 = vector.load %arg2[%c0_1, %c0_2] : memref<32x256xf32, #tpu.memory_space<vmem>>, vector<32x256xf32>
    %cst = arith.constant dense<0.000000e+00> : vector<64x256xf32>
    %7 = tpu.matmul %5, %6, %cst {dimension_numbers = #tpu.dot_dimension_numbers<[1], [0], [0], [1], [0, 0, 1, 1], [], []>} : vector<64x32xf32>, vector<32x256xf32>, vector<64x256xf32> -> vector<64x256xf32>
    %c0_3 = arith.constant 0 : index
    %c0_4 = arith.constant 0 : index
    %8 = vector.load %arg3[%c0_3, %c0_4] : memref<1x256xf32, #tpu.memory_space<vmem>>, vector<1x256xf32>
    %9 = vector.broadcast %8 : vector<1x256xf32> to vector<64x256xf32>
    %10 = arith.addf %7, %9 : vector<64x256xf32>
    %cst_5 = arith.constant 0.000000e+00 : f32
    %11 = vector.broadcast %cst_5 : f32 to vector<8x32xf32>
    %cst_6 = arith.constant 0.000000e+00 : f32
    %12 = vector.broadcast %cst_6 : f32 to vector<8x32xf32>
    %cst_7 = arith.constant 0.000000e+00 : f32
    %13 = vector.broadcast %cst_7 : f32 to vector<8x32xf32>
    %14 = vector.extract_strided_slice %10 {offsets = [0, 0], sizes = [8, 128], strides = [1, 1]} : vector<64x256xf32> to vector<8x128xf32>
    %15 = vector.extract_strided_slice %10 {offsets = [56, 128], sizes = [8, 128], strides = [1, 1]} : vector<64x256xf32> to vector<8x128xf32>
    %16 = arith.negf %14 : vector<8x128xf32>
    %17 = math.exp %16 : vector<8x128xf32>
    %cst_8 = arith.constant 1.000000e+00 : f32
    %18 = vector.broadcast %cst_8 : f32 to vector<8x128xf32>
    %19 = arith.addf %18, %17 : vector<8x128xf32>
    %20 = arith.divf %18, %19 : vector<8x128xf32>
    %21 = vector.extract_strided_slice %20 {offsets = [0, 0], sizes = [8, 32], strides = [1, 1]} : vector<8x128xf32> to vector<8x32xf32>
    %22 = vector.extract_strided_slice %20 {offsets = [0, 32], sizes = [8, 32], strides = [1, 1]} : vector<8x128xf32> to vector<8x32xf32>
    %23 = vector.extract_strided_slice %20 {offsets = [0, 64], sizes = [8, 32], strides = [1, 1]} : vector<8x128xf32> to vector<8x32xf32>
    %cst_9 = arith.constant 2.000000e+00 : f32
    %24 = vector.broadcast %cst_9 : f32 to vector<8x32xf32>
    %25 = arith.mulf %24, %23 : vector<8x32xf32>
    %cst_10 = arith.constant 1.000000e+00 : f32
    %26 = vector.broadcast %cst_10 : f32 to vector<8x32xf32>
    %27 = arith.subf %25, %26 : vector<8x32xf32>
    %28 = vector.extract_strided_slice %20 {offsets = [0, 96], sizes = [8, 32], strides = [1, 1]} : vector<8x128xf32> to vector<8x32xf32>
    %29 = arith.mulf %22, %11 : vector<8x32xf32>
    %30 = arith.mulf %21, %27 : vector<8x32xf32>
    %31 = arith.addf %29, %30 : vector<8x32xf32>
    %32 = math.tanh %31 : vector<8x32xf32>
    %33 = arith.mulf %28, %32 : vector<8x32xf32>
    %34 = arith.negf %15 : vector<8x128xf32>
    %35 = math.exp %34 : vector<8x128xf32>
    %cst_11 = arith.constant 1.000000e+00 : f32
    %36 = vector.broadcast %cst_11 : f32 to vector<8x128xf32>
    %37 = arith.addf %36, %35 : vector<8x128xf32>
    %38 = arith.divf %36, %37 : vector<8x128xf32>
    %39 = vector.extract_strided_slice %38 {offsets = [0, 0], sizes = [8, 32], strides = [1, 1]} : vector<8x128xf32> to vector<8x32xf32>
    %40 = vector.extract_strided_slice %38 {offsets = [0, 32], sizes = [8, 32], strides = [1, 1]} : vector<8x128xf32> to vector<8x32xf32>
    %41 = vector.extract_strided_slice %38 {offsets = [0, 64], sizes = [8, 32], strides = [1, 1]} : vector<8x128xf32> to vector<8x32xf32>
    %cst_12 = arith.constant 2.000000e+00 : f32
    %42 = vector.broadcast %cst_12 : f32 to vector<8x32xf32>
    %43 = arith.mulf %42, %41 : vector<8x32xf32>
    %cst_13 = arith.constant 1.000000e+00 : f32
    %44 = vector.broadcast %cst_13 : f32 to vector<8x32xf32>
    %45 = arith.subf %43, %44 : vector<8x32xf32>
    %46 = vector.extract_strided_slice %38 {offsets = [0, 96], sizes = [8, 32], strides = [1, 1]} : vector<8x128xf32> to vector<8x32xf32>
    %47 = arith.mulf %40, %12 : vector<8x32xf32>
    %48 = arith.mulf %39, %45 : vector<8x32xf32>
    %49 = arith.addf %47, %48 : vector<8x32xf32>
    %50 = math.tanh %49 : vector<8x32xf32>
    %51 = arith.mulf %46, %50 : vector<8x32xf32>
    %52 = tpu.concatenate %33, %51 in 1 : vector<8x32xf32>, vector<8x32xf32> -> vector<8x64xf32>
    %53 = arith.truncf %52 : vector<8x64xf32> to vector<8x64xbf16>
    %c0_14 = arith.constant 0 : index
    %c0_15 = arith.constant 0 : index
    %c0_16 = arith.constant 0 : index
    %54 = vector.load %arg4[%c0_14, %c0_15, %c0_16] : memref<8x64x288xbf16, #tpu.memory_space<vmem>>, vector<1x64x288xbf16>
    %55 = vector.shape_cast %54 : vector<1x64x288xbf16> to vector<64x288xbf16>
    %cst_17 = arith.constant dense<0.000000e+00> : vector<8x288xf32>
    %56 = tpu.matmul %53, %55, %cst_17 {dimension_numbers = #tpu.dot_dimension_numbers<[1], [0], [0], [1], [0, 0, 1, 1], [], []>} : vector<8x64xbf16>, vector<64x288xbf16>, vector<8x288xf32> -> vector<8x288xf32>
    %57 = vector.extract_strided_slice %56 {offsets = [0, 256], sizes = [8, 32], strides = [1, 1]} : vector<8x288xf32> to vector<8x32xf32>
    %58 = arith.addf %13, %57 : vector<8x32xf32>
    %59 = vector.extract_strided_slice %10 {offsets = [8, 0], sizes = [8, 128], strides = [1, 1]} : vector<64x256xf32> to vector<8x128xf32>
    %60 = vector.extract_strided_slice %10 {offsets = [48, 128], sizes = [8, 128], strides = [1, 1]} : vector<64x256xf32> to vector<8x128xf32>
    %61 = vector.extract_strided_slice %56 {offsets = [0, 0], sizes = [8, 128], strides = [1, 1]} : vector<8x288xf32> to vector<8x128xf32>
    %62 = arith.addf %59, %61 : vector<8x128xf32>
    %63 = vector.extract_strided_slice %56 {offsets = [0, 128], sizes = [8, 128], strides = [1, 1]} : vector<8x288xf32> to vector<8x128xf32>
    %64 = arith.addf %60, %63 : vector<8x128xf32>
    %65 = arith.negf %62 : vector<8x128xf32>
    %66 = math.exp %65 : vector<8x128xf32>
    %cst_18 = arith.constant 1.000000e+00 : f32
    %67 = vector.broadcast %cst_18 : f32 to vector<8x128xf32>
    %68 = arith.addf %67, %66 : vector<8x128xf32>
    %69 = arith.divf %67, %68 : vector<8x128xf32>
    %70 = vector.extract_strided_slice %69 {offsets = [0, 0], sizes = [8, 32], strides = [1, 1]} : vector<8x128xf32> to vector<8x32xf32>
    %71 = vector.extract_strided_slice %69 {offsets = [0, 32], sizes = [8, 32], strides = [1, 1]} : vector<8x128xf32> to vector<8x32xf32>
    %72 = vector.extract_strided_slice %69 {offsets = [0, 64], sizes = [8, 32], strides = [1, 1]} : vector<8x128xf32> to vector<8x32xf32>
    %cst_19 = arith.constant 2.000000e+00 : f32
    %73 = vector.broadcast %cst_19 : f32 to vector<8x32xf32>
    %74 = arith.mulf %73, %72 : vector<8x32xf32>
    %cst_20 = arith.constant 1.000000e+00 : f32
    %75 = vector.broadcast %cst_20 : f32 to vector<8x32xf32>
    %76 = arith.subf %74, %75 : vector<8x32xf32>
    %77 = vector.extract_strided_slice %69 {offsets = [0, 96], sizes = [8, 32], strides = [1, 1]} : vector<8x128xf32> to vector<8x32xf32>
    %78 = arith.mulf %71, %31 : vector<8x32xf32>
    %79 = arith.mulf %70, %76 : vector<8x32xf32>
    %80 = arith.addf %78, %79 : vector<8x32xf32>
    %81 = math.tanh %80 : vector<8x32xf32>
    %82 = arith.mulf %77, %81 : vector<8x32xf32>
    %83 = arith.negf %64 : vector<8x128xf32>
    %84 = math.exp %83 : vector<8x128xf32>
    %cst_21 = arith.constant 1.000000e+00 : f32
    %85 = vector.broadcast %cst_21 : f32 to vector<8x128xf32>
    %86 = arith.addf %85, %84 : vector<8x128xf32>
    %87 = arith.divf %85, %86 : vector<8x128xf32>
    %88 = vector.extract_strided_slice %87 {offsets = [0, 0], sizes = [8, 32], strides = [1, 1]} : vector<8x128xf32> to vector<8x32xf32>
    %89 = vector.extract_strided_slice %87 {offsets = [0, 32], sizes = [8, 32], strides = [1, 1]} : vector<8x128xf32> to vector<8x32xf32>
    %90 = vector.extract_strided_slice %87 {offsets = [0, 64], sizes = [8, 32], strides = [1, 1]} : vector<8x128xf32> to vector<8x32xf32>
    %cst_22 = arith.constant 2.000000e+00 : f32
    %91 = vector.broadcast %cst_22 : f32 to vector<8x32xf32>
    %92 = arith.mulf %91, %90 : vector<8x32xf32>
    %cst_23 = arith.constant 1.000000e+00 : f32
    %93 = vector.broadcast %cst_23 : f32 to vector<8x32xf32>
    %94 = arith.subf %92, %93 : vector<8x32xf32>
    %95 = vector.extract_strided_slice %87 {offsets = [0, 96], sizes = [8, 32], strides = [1, 1]} : vector<8x128xf32> to vector<8x32xf32>
    %96 = arith.mulf %89, %49 : vector<8x32xf32>
    %97 = arith.mulf %88, %94 : vector<8x32xf32>
    %98 = arith.addf %96, %97 : vector<8x32xf32>
    %99 = math.tanh %98 : vector<8x32xf32>
    %100 = arith.mulf %95, %99 : vector<8x32xf32>
    %101 = tpu.concatenate %82, %100 in 1 : vector<8x32xf32>, vector<8x32xf32> -> vector<8x64xf32>
    %102 = arith.truncf %101 : vector<8x64xf32> to vector<8x64xbf16>
    %c1 = arith.constant 1 : index
    %c0_24 = arith.constant 0 : index
    %c0_25 = arith.constant 0 : index
    %103 = vector.load %arg4[%c1, %c0_24, %c0_25] : memref<8x64x288xbf16, #tpu.memory_space<vmem>>, vector<1x64x288xbf16>
    %104 = vector.shape_cast %103 : vector<1x64x288xbf16> to vector<64x288xbf16>
    %cst_26 = arith.constant dense<0.000000e+00> : vector<8x288xf32>
    %105 = tpu.matmul %102, %104, %cst_26 {dimension_numbers = #tpu.dot_dimension_numbers<[1], [0], [0], [1], [0, 0, 1, 1], [], []>} : vector<8x64xbf16>, vector<64x288xbf16>, vector<8x288xf32> -> vector<8x288xf32>
    %106 = vector.extract_strided_slice %105 {offsets = [0, 256], sizes = [8, 32], strides = [1, 1]} : vector<8x288xf32> to vector<8x32xf32>
    %107 = arith.addf %58, %106 : vector<8x32xf32>
    %108 = vector.extract_strided_slice %10 {offsets = [16, 0], sizes = [8, 128], strides = [1, 1]} : vector<64x256xf32> to vector<8x128xf32>
    %109 = vector.extract_strided_slice %10 {offsets = [40, 128], sizes = [8, 128], strides = [1, 1]} : vector<64x256xf32> to vector<8x128xf32>
    %110 = vector.extract_strided_slice %105 {offsets = [0, 0], sizes = [8, 128], strides = [1, 1]} : vector<8x288xf32> to vector<8x128xf32>
    %111 = arith.addf %108, %110 : vector<8x128xf32>
    %112 = vector.extract_strided_slice %105 {offsets = [0, 128], sizes = [8, 128], strides = [1, 1]} : vector<8x288xf32> to vector<8x128xf32>
    %113 = arith.addf %109, %112 : vector<8x128xf32>
    %114 = arith.negf %111 : vector<8x128xf32>
    %115 = math.exp %114 : vector<8x128xf32>
    %cst_27 = arith.constant 1.000000e+00 : f32
    %116 = vector.broadcast %cst_27 : f32 to vector<8x128xf32>
    %117 = arith.addf %116, %115 : vector<8x128xf32>
    %118 = arith.divf %116, %117 : vector<8x128xf32>
    %119 = vector.extract_strided_slice %118 {offsets = [0, 0], sizes = [8, 32], strides = [1, 1]} : vector<8x128xf32> to vector<8x32xf32>
    %120 = vector.extract_strided_slice %118 {offsets = [0, 32], sizes = [8, 32], strides = [1, 1]} : vector<8x128xf32> to vector<8x32xf32>
    %121 = vector.extract_strided_slice %118 {offsets = [0, 64], sizes = [8, 32], strides = [1, 1]} : vector<8x128xf32> to vector<8x32xf32>
    %cst_28 = arith.constant 2.000000e+00 : f32
    %122 = vector.broadcast %cst_28 : f32 to vector<8x32xf32>
    %123 = arith.mulf %122, %121 : vector<8x32xf32>
    %cst_29 = arith.constant 1.000000e+00 : f32
    %124 = vector.broadcast %cst_29 : f32 to vector<8x32xf32>
    %125 = arith.subf %123, %124 : vector<8x32xf32>
    %126 = vector.extract_strided_slice %118 {offsets = [0, 96], sizes = [8, 32], strides = [1, 1]} : vector<8x128xf32> to vector<8x32xf32>
    %127 = arith.mulf %120, %80 : vector<8x32xf32>
    %128 = arith.mulf %119, %125 : vector<8x32xf32>
    %129 = arith.addf %127, %128 : vector<8x32xf32>
    %130 = math.tanh %129 : vector<8x32xf32>
    %131 = arith.mulf %126, %130 : vector<8x32xf32>
    %132 = arith.negf %113 : vector<8x128xf32>
    %133 = math.exp %132 : vector<8x128xf32>
    %cst_30 = arith.constant 1.000000e+00 : f32
    %134 = vector.broadcast %cst_30 : f32 to vector<8x128xf32>
    %135 = arith.addf %134, %133 : vector<8x128xf32>
    %136 = arith.divf %134, %135 : vector<8x128xf32>
    %137 = vector.extract_strided_slice %136 {offsets = [0, 0], sizes = [8, 32], strides = [1, 1]} : vector<8x128xf32> to vector<8x32xf32>
    %138 = vector.extract_strided_slice %136 {offsets = [0, 32], sizes = [8, 32], strides = [1, 1]} : vector<8x128xf32> to vector<8x32xf32>
    %139 = vector.extract_strided_slice %136 {offsets = [0, 64], sizes = [8, 32], strides = [1, 1]} : vector<8x128xf32> to vector<8x32xf32>
    %cst_31 = arith.constant 2.000000e+00 : f32
    %140 = vector.broadcast %cst_31 : f32 to vector<8x32xf32>
    %141 = arith.mulf %140, %139 : vector<8x32xf32>
    %cst_32 = arith.constant 1.000000e+00 : f32
    %142 = vector.broadcast %cst_32 : f32 to vector<8x32xf32>
    %143 = arith.subf %141, %142 : vector<8x32xf32>
    %144 = vector.extract_strided_slice %136 {offsets = [0, 96], sizes = [8, 32], strides = [1, 1]} : vector<8x128xf32> to vector<8x32xf32>
    %145 = arith.mulf %138, %98 : vector<8x32xf32>
    %146 = arith.mulf %137, %143 : vector<8x32xf32>
    %147 = arith.addf %145, %146 : vector<8x32xf32>
    %148 = math.tanh %147 : vector<8x32xf32>
    %149 = arith.mulf %144, %148 : vector<8x32xf32>
    %150 = tpu.concatenate %131, %149 in 1 : vector<8x32xf32>, vector<8x32xf32> -> vector<8x64xf32>
    %151 = arith.truncf %150 : vector<8x64xf32> to vector<8x64xbf16>
    %c2 = arith.constant 2 : index
    %c0_33 = arith.constant 0 : index
    %c0_34 = arith.constant 0 : index
    %152 = vector.load %arg4[%c2, %c0_33, %c0_34] : memref<8x64x288xbf16, #tpu.memory_space<vmem>>, vector<1x64x288xbf16>
    %153 = vector.shape_cast %152 : vector<1x64x288xbf16> to vector<64x288xbf16>
    %cst_35 = arith.constant dense<0.000000e+00> : vector<8x288xf32>
    %154 = tpu.matmul %151, %153, %cst_35 {dimension_numbers = #tpu.dot_dimension_numbers<[1], [0], [0], [1], [0, 0, 1, 1], [], []>} : vector<8x64xbf16>, vector<64x288xbf16>, vector<8x288xf32> -> vector<8x288xf32>
    %155 = vector.extract_strided_slice %154 {offsets = [0, 256], sizes = [8, 32], strides = [1, 1]} : vector<8x288xf32> to vector<8x32xf32>
    %156 = arith.addf %107, %155 : vector<8x32xf32>
    %157 = vector.extract_strided_slice %10 {offsets = [24, 0], sizes = [8, 128], strides = [1, 1]} : vector<64x256xf32> to vector<8x128xf32>
    %158 = vector.extract_strided_slice %10 {offsets = [32, 128], sizes = [8, 128], strides = [1, 1]} : vector<64x256xf32> to vector<8x128xf32>
    %159 = vector.extract_strided_slice %154 {offsets = [0, 0], sizes = [8, 128], strides = [1, 1]} : vector<8x288xf32> to vector<8x128xf32>
    %160 = arith.addf %157, %159 : vector<8x128xf32>
    %161 = vector.extract_strided_slice %154 {offsets = [0, 128], sizes = [8, 128], strides = [1, 1]} : vector<8x288xf32> to vector<8x128xf32>
    %162 = arith.addf %158, %161 : vector<8x128xf32>
    %163 = arith.negf %160 : vector<8x128xf32>
    %164 = math.exp %163 : vector<8x128xf32>
    %cst_36 = arith.constant 1.000000e+00 : f32
    %165 = vector.broadcast %cst_36 : f32 to vector<8x128xf32>
    %166 = arith.addf %165, %164 : vector<8x128xf32>
    %167 = arith.divf %165, %166 : vector<8x128xf32>
    %168 = vector.extract_strided_slice %167 {offsets = [0, 0], sizes = [8, 32], strides = [1, 1]} : vector<8x128xf32> to vector<8x32xf32>
    %169 = vector.extract_strided_slice %167 {offsets = [0, 32], sizes = [8, 32], strides = [1, 1]} : vector<8x128xf32> to vector<8x32xf32>
    %170 = vector.extract_strided_slice %167 {offsets = [0, 64], sizes = [8, 32], strides = [1, 1]} : vector<8x128xf32> to vector<8x32xf32>
    %cst_37 = arith.constant 2.000000e+00 : f32
    %171 = vector.broadcast %cst_37 : f32 to vector<8x32xf32>
    %172 = arith.mulf %171, %170 : vector<8x32xf32>
    %cst_38 = arith.constant 1.000000e+00 : f32
    %173 = vector.broadcast %cst_38 : f32 to vector<8x32xf32>
    %174 = arith.subf %172, %173 : vector<8x32xf32>
    %175 = vector.extract_strided_slice %167 {offsets = [0, 96], sizes = [8, 32], strides = [1, 1]} : vector<8x128xf32> to vector<8x32xf32>
    %176 = arith.mulf %169, %129 : vector<8x32xf32>
    %177 = arith.mulf %168, %174 : vector<8x32xf32>
    %178 = arith.addf %176, %177 : vector<8x32xf32>
    %179 = math.tanh %178 : vector<8x32xf32>
    %180 = arith.mulf %175, %179 : vector<8x32xf32>
    %181 = arith.negf %162 : vector<8x128xf32>
    %182 = math.exp %181 : vector<8x128xf32>
    %cst_39 = arith.constant 1.000000e+00 : f32
    %183 = vector.broadcast %cst_39 : f32 to vector<8x128xf32>
    %184 = arith.addf %183, %182 : vector<8x128xf32>
    %185 = arith.divf %183, %184 : vector<8x128xf32>
    %186 = vector.extract_strided_slice %185 {offsets = [0, 0], sizes = [8, 32], strides = [1, 1]} : vector<8x128xf32> to vector<8x32xf32>
    %187 = vector.extract_strided_slice %185 {offsets = [0, 32], sizes = [8, 32], strides = [1, 1]} : vector<8x128xf32> to vector<8x32xf32>
    %188 = vector.extract_strided_slice %185 {offsets = [0, 64], sizes = [8, 32], strides = [1, 1]} : vector<8x128xf32> to vector<8x32xf32>
    %cst_40 = arith.constant 2.000000e+00 : f32
    %189 = vector.broadcast %cst_40 : f32 to vector<8x32xf32>
    %190 = arith.mulf %189, %188 : vector<8x32xf32>
    %cst_41 = arith.constant 1.000000e+00 : f32
    %191 = vector.broadcast %cst_41 : f32 to vector<8x32xf32>
    %192 = arith.subf %190, %191 : vector<8x32xf32>
    %193 = vector.extract_strided_slice %185 {offsets = [0, 96], sizes = [8, 32], strides = [1, 1]} : vector<8x128xf32> to vector<8x32xf32>
    %194 = arith.mulf %187, %147 : vector<8x32xf32>
    %195 = arith.mulf %186, %192 : vector<8x32xf32>
    %196 = arith.addf %194, %195 : vector<8x32xf32>
    %197 = math.tanh %196 : vector<8x32xf32>
    %198 = arith.mulf %193, %197 : vector<8x32xf32>
    %199 = tpu.concatenate %180, %198 in 1 : vector<8x32xf32>, vector<8x32xf32> -> vector<8x64xf32>
    %200 = arith.truncf %199 : vector<8x64xf32> to vector<8x64xbf16>
    %c3 = arith.constant 3 : index
    %c0_42 = arith.constant 0 : index
    %c0_43 = arith.constant 0 : index
    %201 = vector.load %arg4[%c3, %c0_42, %c0_43] : memref<8x64x288xbf16, #tpu.memory_space<vmem>>, vector<1x64x288xbf16>
    %202 = vector.shape_cast %201 : vector<1x64x288xbf16> to vector<64x288xbf16>
    %cst_44 = arith.constant dense<0.000000e+00> : vector<8x288xf32>
    %203 = tpu.matmul %200, %202, %cst_44 {dimension_numbers = #tpu.dot_dimension_numbers<[1], [0], [0], [1], [0, 0, 1, 1], [], []>} : vector<8x64xbf16>, vector<64x288xbf16>, vector<8x288xf32> -> vector<8x288xf32>
    %204 = vector.extract_strided_slice %203 {offsets = [0, 256], sizes = [8, 32], strides = [1, 1]} : vector<8x288xf32> to vector<8x32xf32>
    %205 = arith.addf %156, %204 : vector<8x32xf32>
    %206 = vector.extract_strided_slice %10 {offsets = [32, 0], sizes = [8, 128], strides = [1, 1]} : vector<64x256xf32> to vector<8x128xf32>
    %207 = vector.extract_strided_slice %10 {offsets = [24, 128], sizes = [8, 128], strides = [1, 1]} : vector<64x256xf32> to vector<8x128xf32>
    %208 = vector.extract_strided_slice %203 {offsets = [0, 0], sizes = [8, 128], strides = [1, 1]} : vector<8x288xf32> to vector<8x128xf32>
    %209 = arith.addf %206, %208 : vector<8x128xf32>
    %210 = vector.extract_strided_slice %203 {offsets = [0, 128], sizes = [8, 128], strides = [1, 1]} : vector<8x288xf32> to vector<8x128xf32>
    %211 = arith.addf %207, %210 : vector<8x128xf32>
    %212 = arith.negf %209 : vector<8x128xf32>
    %213 = math.exp %212 : vector<8x128xf32>
    %cst_45 = arith.constant 1.000000e+00 : f32
    %214 = vector.broadcast %cst_45 : f32 to vector<8x128xf32>
    %215 = arith.addf %214, %213 : vector<8x128xf32>
    %216 = arith.divf %214, %215 : vector<8x128xf32>
    %217 = vector.extract_strided_slice %216 {offsets = [0, 0], sizes = [8, 32], strides = [1, 1]} : vector<8x128xf32> to vector<8x32xf32>
    %218 = vector.extract_strided_slice %216 {offsets = [0, 32], sizes = [8, 32], strides = [1, 1]} : vector<8x128xf32> to vector<8x32xf32>
    %219 = vector.extract_strided_slice %216 {offsets = [0, 64], sizes = [8, 32], strides = [1, 1]} : vector<8x128xf32> to vector<8x32xf32>
    %cst_46 = arith.constant 2.000000e+00 : f32
    %220 = vector.broadcast %cst_46 : f32 to vector<8x32xf32>
    %221 = arith.mulf %220, %219 : vector<8x32xf32>
    %cst_47 = arith.constant 1.000000e+00 : f32
    %222 = vector.broadcast %cst_47 : f32 to vector<8x32xf32>
    %223 = arith.subf %221, %222 : vector<8x32xf32>
    %224 = vector.extract_strided_slice %216 {offsets = [0, 96], sizes = [8, 32], strides = [1, 1]} : vector<8x128xf32> to vector<8x32xf32>
    %225 = arith.mulf %218, %178 : vector<8x32xf32>
    %226 = arith.mulf %217, %223 : vector<8x32xf32>
    %227 = arith.addf %225, %226 : vector<8x32xf32>
    %228 = math.tanh %227 : vector<8x32xf32>
    %229 = arith.mulf %224, %228 : vector<8x32xf32>
    %230 = arith.negf %211 : vector<8x128xf32>
    %231 = math.exp %230 : vector<8x128xf32>
    %cst_48 = arith.constant 1.000000e+00 : f32
    %232 = vector.broadcast %cst_48 : f32 to vector<8x128xf32>
    %233 = arith.addf %232, %231 : vector<8x128xf32>
    %234 = arith.divf %232, %233 : vector<8x128xf32>
    %235 = vector.extract_strided_slice %234 {offsets = [0, 0], sizes = [8, 32], strides = [1, 1]} : vector<8x128xf32> to vector<8x32xf32>
    %236 = vector.extract_strided_slice %234 {offsets = [0, 32], sizes = [8, 32], strides = [1, 1]} : vector<8x128xf32> to vector<8x32xf32>
    %237 = vector.extract_strided_slice %234 {offsets = [0, 64], sizes = [8, 32], strides = [1, 1]} : vector<8x128xf32> to vector<8x32xf32>
    %cst_49 = arith.constant 2.000000e+00 : f32
    %238 = vector.broadcast %cst_49 : f32 to vector<8x32xf32>
    %239 = arith.mulf %238, %237 : vector<8x32xf32>
    %cst_50 = arith.constant 1.000000e+00 : f32
    %240 = vector.broadcast %cst_50 : f32 to vector<8x32xf32>
    %241 = arith.subf %239, %240 : vector<8x32xf32>
    %242 = vector.extract_strided_slice %234 {offsets = [0, 96], sizes = [8, 32], strides = [1, 1]} : vector<8x128xf32> to vector<8x32xf32>
    %243 = arith.mulf %236, %196 : vector<8x32xf32>
    %244 = arith.mulf %235, %241 : vector<8x32xf32>
    %245 = arith.addf %243, %244 : vector<8x32xf32>
    %246 = math.tanh %245 : vector<8x32xf32>
    %247 = arith.mulf %242, %246 : vector<8x32xf32>
    %248 = tpu.concatenate %229, %247 in 1 : vector<8x32xf32>, vector<8x32xf32> -> vector<8x64xf32>
    %249 = arith.truncf %248 : vector<8x64xf32> to vector<8x64xbf16>
    %c4 = arith.constant 4 : index
    %c0_51 = arith.constant 0 : index
    %c0_52 = arith.constant 0 : index
    %250 = vector.load %arg4[%c4, %c0_51, %c0_52] : memref<8x64x288xbf16, #tpu.memory_space<vmem>>, vector<1x64x288xbf16>
    %251 = vector.shape_cast %250 : vector<1x64x288xbf16> to vector<64x288xbf16>
    %cst_53 = arith.constant dense<0.000000e+00> : vector<8x288xf32>
    %252 = tpu.matmul %249, %251, %cst_53 {dimension_numbers = #tpu.dot_dimension_numbers<[1], [0], [0], [1], [0, 0, 1, 1], [], []>} : vector<8x64xbf16>, vector<64x288xbf16>, vector<8x288xf32> -> vector<8x288xf32>
    %253 = vector.extract_strided_slice %252 {offsets = [0, 256], sizes = [8, 32], strides = [1, 1]} : vector<8x288xf32> to vector<8x32xf32>
    %254 = arith.addf %205, %253 : vector<8x32xf32>
    %255 = vector.extract_strided_slice %10 {offsets = [40, 0], sizes = [8, 128], strides = [1, 1]} : vector<64x256xf32> to vector<8x128xf32>
    %256 = vector.extract_strided_slice %10 {offsets = [16, 128], sizes = [8, 128], strides = [1, 1]} : vector<64x256xf32> to vector<8x128xf32>
    %257 = vector.extract_strided_slice %252 {offsets = [0, 0], sizes = [8, 128], strides = [1, 1]} : vector<8x288xf32> to vector<8x128xf32>
    %258 = arith.addf %255, %257 : vector<8x128xf32>
    %259 = vector.extract_strided_slice %252 {offsets = [0, 128], sizes = [8, 128], strides = [1, 1]} : vector<8x288xf32> to vector<8x128xf32>
    %260 = arith.addf %256, %259 : vector<8x128xf32>
    %261 = arith.negf %258 : vector<8x128xf32>
    %262 = math.exp %261 : vector<8x128xf32>
    %cst_54 = arith.constant 1.000000e+00 : f32
    %263 = vector.broadcast %cst_54 : f32 to vector<8x128xf32>
    %264 = arith.addf %263, %262 : vector<8x128xf32>
    %265 = arith.divf %263, %264 : vector<8x128xf32>
    %266 = vector.extract_strided_slice %265 {offsets = [0, 0], sizes = [8, 32], strides = [1, 1]} : vector<8x128xf32> to vector<8x32xf32>
    %267 = vector.extract_strided_slice %265 {offsets = [0, 32], sizes = [8, 32], strides = [1, 1]} : vector<8x128xf32> to vector<8x32xf32>
    %268 = vector.extract_strided_slice %265 {offsets = [0, 64], sizes = [8, 32], strides = [1, 1]} : vector<8x128xf32> to vector<8x32xf32>
    %cst_55 = arith.constant 2.000000e+00 : f32
    %269 = vector.broadcast %cst_55 : f32 to vector<8x32xf32>
    %270 = arith.mulf %269, %268 : vector<8x32xf32>
    %cst_56 = arith.constant 1.000000e+00 : f32
    %271 = vector.broadcast %cst_56 : f32 to vector<8x32xf32>
    %272 = arith.subf %270, %271 : vector<8x32xf32>
    %273 = vector.extract_strided_slice %265 {offsets = [0, 96], sizes = [8, 32], strides = [1, 1]} : vector<8x128xf32> to vector<8x32xf32>
    %274 = arith.mulf %267, %227 : vector<8x32xf32>
    %275 = arith.mulf %266, %272 : vector<8x32xf32>
    %276 = arith.addf %274, %275 : vector<8x32xf32>
    %277 = math.tanh %276 : vector<8x32xf32>
    %278 = arith.mulf %273, %277 : vector<8x32xf32>
    %279 = arith.negf %260 : vector<8x128xf32>
    %280 = math.exp %279 : vector<8x128xf32>
    %cst_57 = arith.constant 1.000000e+00 : f32
    %281 = vector.broadcast %cst_57 : f32 to vector<8x128xf32>
    %282 = arith.addf %281, %280 : vector<8x128xf32>
    %283 = arith.divf %281, %282 : vector<8x128xf32>
    %284 = vector.extract_strided_slice %283 {offsets = [0, 0], sizes = [8, 32], strides = [1, 1]} : vector<8x128xf32> to vector<8x32xf32>
    %285 = vector.extract_strided_slice %283 {offsets = [0, 32], sizes = [8, 32], strides = [1, 1]} : vector<8x128xf32> to vector<8x32xf32>
    %286 = vector.extract_strided_slice %283 {offsets = [0, 64], sizes = [8, 32], strides = [1, 1]} : vector<8x128xf32> to vector<8x32xf32>
    %cst_58 = arith.constant 2.000000e+00 : f32
    %287 = vector.broadcast %cst_58 : f32 to vector<8x32xf32>
    %288 = arith.mulf %287, %286 : vector<8x32xf32>
    %cst_59 = arith.constant 1.000000e+00 : f32
    %289 = vector.broadcast %cst_59 : f32 to vector<8x32xf32>
    %290 = arith.subf %288, %289 : vector<8x32xf32>
    %291 = vector.extract_strided_slice %283 {offsets = [0, 96], sizes = [8, 32], strides = [1, 1]} : vector<8x128xf32> to vector<8x32xf32>
    %292 = arith.mulf %285, %245 : vector<8x32xf32>
    %293 = arith.mulf %284, %290 : vector<8x32xf32>
    %294 = arith.addf %292, %293 : vector<8x32xf32>
    %295 = math.tanh %294 : vector<8x32xf32>
    %296 = arith.mulf %291, %295 : vector<8x32xf32>
    %297 = tpu.concatenate %278, %296 in 1 : vector<8x32xf32>, vector<8x32xf32> -> vector<8x64xf32>
    %298 = arith.truncf %297 : vector<8x64xf32> to vector<8x64xbf16>
    %c5 = arith.constant 5 : index
    %c0_60 = arith.constant 0 : index
    %c0_61 = arith.constant 0 : index
    %299 = vector.load %arg4[%c5, %c0_60, %c0_61] : memref<8x64x288xbf16, #tpu.memory_space<vmem>>, vector<1x64x288xbf16>
    %300 = vector.shape_cast %299 : vector<1x64x288xbf16> to vector<64x288xbf16>
    %cst_62 = arith.constant dense<0.000000e+00> : vector<8x288xf32>
    %301 = tpu.matmul %298, %300, %cst_62 {dimension_numbers = #tpu.dot_dimension_numbers<[1], [0], [0], [1], [0, 0, 1, 1], [], []>} : vector<8x64xbf16>, vector<64x288xbf16>, vector<8x288xf32> -> vector<8x288xf32>
    %302 = vector.extract_strided_slice %301 {offsets = [0, 256], sizes = [8, 32], strides = [1, 1]} : vector<8x288xf32> to vector<8x32xf32>
    %303 = arith.addf %254, %302 : vector<8x32xf32>
    %304 = vector.extract_strided_slice %10 {offsets = [48, 0], sizes = [8, 128], strides = [1, 1]} : vector<64x256xf32> to vector<8x128xf32>
    %305 = vector.extract_strided_slice %10 {offsets = [8, 128], sizes = [8, 128], strides = [1, 1]} : vector<64x256xf32> to vector<8x128xf32>
    %306 = vector.extract_strided_slice %301 {offsets = [0, 0], sizes = [8, 128], strides = [1, 1]} : vector<8x288xf32> to vector<8x128xf32>
    %307 = arith.addf %304, %306 : vector<8x128xf32>
    %308 = vector.extract_strided_slice %301 {offsets = [0, 128], sizes = [8, 128], strides = [1, 1]} : vector<8x288xf32> to vector<8x128xf32>
    %309 = arith.addf %305, %308 : vector<8x128xf32>
    %310 = arith.negf %307 : vector<8x128xf32>
    %311 = math.exp %310 : vector<8x128xf32>
    %cst_63 = arith.constant 1.000000e+00 : f32
    %312 = vector.broadcast %cst_63 : f32 to vector<8x128xf32>
    %313 = arith.addf %312, %311 : vector<8x128xf32>
    %314 = arith.divf %312, %313 : vector<8x128xf32>
    %315 = vector.extract_strided_slice %314 {offsets = [0, 0], sizes = [8, 32], strides = [1, 1]} : vector<8x128xf32> to vector<8x32xf32>
    %316 = vector.extract_strided_slice %314 {offsets = [0, 32], sizes = [8, 32], strides = [1, 1]} : vector<8x128xf32> to vector<8x32xf32>
    %317 = vector.extract_strided_slice %314 {offsets = [0, 64], sizes = [8, 32], strides = [1, 1]} : vector<8x128xf32> to vector<8x32xf32>
    %cst_64 = arith.constant 2.000000e+00 : f32
    %318 = vector.broadcast %cst_64 : f32 to vector<8x32xf32>
    %319 = arith.mulf %318, %317 : vector<8x32xf32>
    %cst_65 = arith.constant 1.000000e+00 : f32
    %320 = vector.broadcast %cst_65 : f32 to vector<8x32xf32>
    %321 = arith.subf %319, %320 : vector<8x32xf32>
    %322 = vector.extract_strided_slice %314 {offsets = [0, 96], sizes = [8, 32], strides = [1, 1]} : vector<8x128xf32> to vector<8x32xf32>
    %323 = arith.mulf %316, %276 : vector<8x32xf32>
    %324 = arith.mulf %315, %321 : vector<8x32xf32>
    %325 = arith.addf %323, %324 : vector<8x32xf32>
    %326 = math.tanh %325 : vector<8x32xf32>
    %327 = arith.mulf %322, %326 : vector<8x32xf32>
    %328 = arith.negf %309 : vector<8x128xf32>
    %329 = math.exp %328 : vector<8x128xf32>
    %cst_66 = arith.constant 1.000000e+00 : f32
    %330 = vector.broadcast %cst_66 : f32 to vector<8x128xf32>
    %331 = arith.addf %330, %329 : vector<8x128xf32>
    %332 = arith.divf %330, %331 : vector<8x128xf32>
    %333 = vector.extract_strided_slice %332 {offsets = [0, 0], sizes = [8, 32], strides = [1, 1]} : vector<8x128xf32> to vector<8x32xf32>
    %334 = vector.extract_strided_slice %332 {offsets = [0, 32], sizes = [8, 32], strides = [1, 1]} : vector<8x128xf32> to vector<8x32xf32>
    %335 = vector.extract_strided_slice %332 {offsets = [0, 64], sizes = [8, 32], strides = [1, 1]} : vector<8x128xf32> to vector<8x32xf32>
    %cst_67 = arith.constant 2.000000e+00 : f32
    %336 = vector.broadcast %cst_67 : f32 to vector<8x32xf32>
    %337 = arith.mulf %336, %335 : vector<8x32xf32>
    %cst_68 = arith.constant 1.000000e+00 : f32
    %338 = vector.broadcast %cst_68 : f32 to vector<8x32xf32>
    %339 = arith.subf %337, %338 : vector<8x32xf32>
    %340 = vector.extract_strided_slice %332 {offsets = [0, 96], sizes = [8, 32], strides = [1, 1]} : vector<8x128xf32> to vector<8x32xf32>
    %341 = arith.mulf %334, %294 : vector<8x32xf32>
    %342 = arith.mulf %333, %339 : vector<8x32xf32>
    %343 = arith.addf %341, %342 : vector<8x32xf32>
    %344 = math.tanh %343 : vector<8x32xf32>
    %345 = arith.mulf %340, %344 : vector<8x32xf32>
    %346 = tpu.concatenate %327, %345 in 1 : vector<8x32xf32>, vector<8x32xf32> -> vector<8x64xf32>
    %347 = arith.truncf %346 : vector<8x64xf32> to vector<8x64xbf16>
    %c6 = arith.constant 6 : index
    %c0_69 = arith.constant 0 : index
    %c0_70 = arith.constant 0 : index
    %348 = vector.load %arg4[%c6, %c0_69, %c0_70] : memref<8x64x288xbf16, #tpu.memory_space<vmem>>, vector<1x64x288xbf16>
    %349 = vector.shape_cast %348 : vector<1x64x288xbf16> to vector<64x288xbf16>
    %cst_71 = arith.constant dense<0.000000e+00> : vector<8x288xf32>
    %350 = tpu.matmul %347, %349, %cst_71 {dimension_numbers = #tpu.dot_dimension_numbers<[1], [0], [0], [1], [0, 0, 1, 1], [], []>} : vector<8x64xbf16>, vector<64x288xbf16>, vector<8x288xf32> -> vector<8x288xf32>
    %351 = vector.extract_strided_slice %350 {offsets = [0, 256], sizes = [8, 32], strides = [1, 1]} : vector<8x288xf32> to vector<8x32xf32>
    %352 = arith.addf %303, %351 : vector<8x32xf32>
    %353 = vector.extract_strided_slice %10 {offsets = [56, 0], sizes = [8, 128], strides = [1, 1]} : vector<64x256xf32> to vector<8x128xf32>
    %354 = vector.extract_strided_slice %10 {offsets = [0, 128], sizes = [8, 128], strides = [1, 1]} : vector<64x256xf32> to vector<8x128xf32>
    %355 = vector.extract_strided_slice %350 {offsets = [0, 0], sizes = [8, 128], strides = [1, 1]} : vector<8x288xf32> to vector<8x128xf32>
    %356 = arith.addf %353, %355 : vector<8x128xf32>
    %357 = vector.extract_strided_slice %350 {offsets = [0, 128], sizes = [8, 128], strides = [1, 1]} : vector<8x288xf32> to vector<8x128xf32>
    %358 = arith.addf %354, %357 : vector<8x128xf32>
    %359 = arith.negf %356 : vector<8x128xf32>
    %360 = math.exp %359 : vector<8x128xf32>
    %cst_72 = arith.constant 1.000000e+00 : f32
    %361 = vector.broadcast %cst_72 : f32 to vector<8x128xf32>
    %362 = arith.addf %361, %360 : vector<8x128xf32>
    %363 = arith.divf %361, %362 : vector<8x128xf32>
    %364 = vector.extract_strided_slice %363 {offsets = [0, 0], sizes = [8, 32], strides = [1, 1]} : vector<8x128xf32> to vector<8x32xf32>
    %365 = vector.extract_strided_slice %363 {offsets = [0, 32], sizes = [8, 32], strides = [1, 1]} : vector<8x128xf32> to vector<8x32xf32>
    %366 = vector.extract_strided_slice %363 {offsets = [0, 64], sizes = [8, 32], strides = [1, 1]} : vector<8x128xf32> to vector<8x32xf32>
    %cst_73 = arith.constant 2.000000e+00 : f32
    %367 = vector.broadcast %cst_73 : f32 to vector<8x32xf32>
    %368 = arith.mulf %367, %366 : vector<8x32xf32>
    %cst_74 = arith.constant 1.000000e+00 : f32
    %369 = vector.broadcast %cst_74 : f32 to vector<8x32xf32>
    %370 = arith.subf %368, %369 : vector<8x32xf32>
    %371 = vector.extract_strided_slice %363 {offsets = [0, 96], sizes = [8, 32], strides = [1, 1]} : vector<8x128xf32> to vector<8x32xf32>
    %372 = arith.mulf %365, %325 : vector<8x32xf32>
    %373 = arith.mulf %364, %370 : vector<8x32xf32>
    %374 = arith.addf %372, %373 : vector<8x32xf32>
    %375 = math.tanh %374 : vector<8x32xf32>
    %376 = arith.mulf %371, %375 : vector<8x32xf32>
    %377 = arith.negf %358 : vector<8x128xf32>
    %378 = math.exp %377 : vector<8x128xf32>
    %cst_75 = arith.constant 1.000000e+00 : f32
    %379 = vector.broadcast %cst_75 : f32 to vector<8x128xf32>
    %380 = arith.addf %379, %378 : vector<8x128xf32>
    %381 = arith.divf %379, %380 : vector<8x128xf32>
    %382 = vector.extract_strided_slice %381 {offsets = [0, 0], sizes = [8, 32], strides = [1, 1]} : vector<8x128xf32> to vector<8x32xf32>
    %383 = vector.extract_strided_slice %381 {offsets = [0, 32], sizes = [8, 32], strides = [1, 1]} : vector<8x128xf32> to vector<8x32xf32>
    %384 = vector.extract_strided_slice %381 {offsets = [0, 64], sizes = [8, 32], strides = [1, 1]} : vector<8x128xf32> to vector<8x32xf32>
    %cst_76 = arith.constant 2.000000e+00 : f32
    %385 = vector.broadcast %cst_76 : f32 to vector<8x32xf32>
    %386 = arith.mulf %385, %384 : vector<8x32xf32>
    %cst_77 = arith.constant 1.000000e+00 : f32
    %387 = vector.broadcast %cst_77 : f32 to vector<8x32xf32>
    %388 = arith.subf %386, %387 : vector<8x32xf32>
    %389 = vector.extract_strided_slice %381 {offsets = [0, 96], sizes = [8, 32], strides = [1, 1]} : vector<8x128xf32> to vector<8x32xf32>
    %390 = arith.mulf %383, %343 : vector<8x32xf32>
    %391 = arith.mulf %382, %388 : vector<8x32xf32>
    %392 = arith.addf %390, %391 : vector<8x32xf32>
    %393 = math.tanh %392 : vector<8x32xf32>
    %394 = arith.mulf %389, %393 : vector<8x32xf32>
    %395 = tpu.concatenate %376, %394 in 1 : vector<8x32xf32>, vector<8x32xf32> -> vector<8x64xf32>
    %396 = arith.truncf %395 : vector<8x64xf32> to vector<8x64xbf16>
    %c7 = arith.constant 7 : index
    %c0_78 = arith.constant 0 : index
    %c0_79 = arith.constant 0 : index
    %397 = vector.load %arg4[%c7, %c0_78, %c0_79] : memref<8x64x288xbf16, #tpu.memory_space<vmem>>, vector<1x64x288xbf16>
    %398 = vector.shape_cast %397 : vector<1x64x288xbf16> to vector<64x288xbf16>
    %cst_80 = arith.constant dense<0.000000e+00> : vector<8x288xf32>
    %399 = tpu.matmul %396, %398, %cst_80 {dimension_numbers = #tpu.dot_dimension_numbers<[1], [0], [0], [1], [0, 0, 1, 1], [], []>} : vector<8x64xbf16>, vector<64x288xbf16>, vector<8x288xf32> -> vector<8x288xf32>
    %400 = vector.extract_strided_slice %399 {offsets = [0, 256], sizes = [8, 32], strides = [1, 1]} : vector<8x288xf32> to vector<8x32xf32>
    %401 = arith.addf %352, %400 : vector<8x32xf32>
    %c0_81 = arith.constant 0 : index
    %c0_82 = arith.constant 0 : index
    %402 = vector.load %arg5[%c0_81, %c0_82] : memref<1x32xf32, #tpu.memory_space<vmem>>, vector<1x32xf32>
    %403 = vector.broadcast %402 : vector<1x32xf32> to vector<8x32xf32>
    %404 = arith.addf %401, %403 : vector<8x32xf32>
    %cst_83 = arith.constant 0.000000e+00 : f32
    %405 = vector.broadcast %cst_83 : f32 to vector<8x32xf32>
    %406 = arith.maximumf %404, %405 : vector<8x32xf32>
    %c0_84 = arith.constant 0 : index
    %c0_85 = arith.constant 0 : index
    %407 = vector.load %arg6[%c0_84, %c0_85] : memref<1x32xf32, #tpu.memory_space<vmem>>, vector<1x32xf32>
    %408 = vector.broadcast %407 : vector<1x32xf32> to vector<8x32xf32>
    %409 = arith.mulf %406, %408 : vector<8x32xf32>
    %cst_86 = arith.constant dense<0.000000e+00> : vector<8xf32>
    %410 = vector.multi_reduction <add>, %409, %cst_86 [1] : vector<8x32xf32> to vector<8xf32>
    %411 = vector.shape_cast %410 : vector<8xf32> to vector<8x1xf32>
    %c0_87 = arith.constant 0 : index
    %c0_88 = arith.constant 0 : index
    %412 = vector.load %arg7[%c0_87, %c0_88] : memref<1x1xf32, #tpu.memory_space<vmem>>, vector<1x1xf32>
    %413 = vector.broadcast %412 : vector<1x1xf32> to vector<8x1xf32>
    %414 = arith.addf %411, %413 : vector<8x1xf32>
    %415 = arith.negf %414 : vector<8x1xf32>
    %416 = math.exp %415 : vector<8x1xf32>
    %cst_89 = arith.constant 1.000000e+00 : f32
    %417 = vector.broadcast %cst_89 : f32 to vector<8x1xf32>
    %418 = arith.addf %417, %416 : vector<8x1xf32>
    %419 = arith.divf %417, %418 : vector<8x1xf32>
    %c0_90 = arith.constant 0 : index
    %c0_91 = arith.constant 0 : index
    %420 = vector.load %arg8[%c0_90, %c0_91] : memref<8x1xf32, #tpu.memory_space<vmem>>, vector<8x1xf32>
    tpu.vector_store %arg8[%c0_90, %c0_91], %419 {strides = array<i32>} : memref<8x1xf32, #tpu.memory_space<vmem>>, vector<8x1xf32>,
    return
  }
  func.func @transform_0(%arg0: i32) -> (i32, i32) {
    %c0_i32 = arith.constant 0 : i32
    %c0_i32_0 = arith.constant 0 : i32
    return %arg0, %c0_i32 : i32, i32
  }
  func.func @transform_1(%arg0: i32) -> (i32, i32) {
    %c0_i32 = arith.constant 0 : i32
    %c0_i32_0 = arith.constant 0 : i32
    %c0_i32_1 = arith.constant 0 : i32
    return %c0_i32, %c0_i32_0 : i32, i32
  }
  func.func @transform_2(%arg0: i32) -> (i32, i32) {
    %c0_i32 = arith.constant 0 : i32
    %c0_i32_0 = arith.constant 0 : i32
    %c0_i32_1 = arith.constant 0 : i32
    return %c0_i32, %c0_i32_0 : i32, i32
  }
  func.func @transform_3(%arg0: i32) -> (i32, i32, i32) {
    %c0_i32 = arith.constant 0 : i32
    %c0_i32_0 = arith.constant 0 : i32
    %c0_i32_1 = arith.constant 0 : i32
    %c0_i32_2 = arith.constant 0 : i32
    return %c0_i32, %c0_i32_0, %c0_i32_1 : i32, i32, i32
  }
  func.func @transform_4(%arg0: i32) -> (i32, i32) {
    %c0_i32 = arith.constant 0 : i32
    %c0_i32_0 = arith.constant 0 : i32
    %c0_i32_1 = arith.constant 0 : i32
    return %c0_i32, %c0_i32_0 : i32, i32
  }
  func.func @transform_5(%arg0: i32) -> (i32, i32) {
    %c0_i32 = arith.constant 0 : i32
    %c0_i32_0 = arith.constant 0 : i32
    %c0_i32_1 = arith.constant 0 : i32
    return %c0_i32, %c0_i32_0 : i32, i32
  }
  func.func @transform_6(%arg0: i32) -> (i32, i32) {
    %c0_i32 = arith.constant 0 : i32
    %c0_i32_0 = arith.constant 0 : i32
    %c0_i32_1 = arith.constant 0 : i32
    return %c0_i32, %c0_i32_0 : i32, i32
  }
  func.func @transform_7(%arg0: i32) -> (i32, i32) {
    %c0_i32 = arith.constant 0 : i32
    %c0_i32_0 = arith.constant 0 : i32
    return %arg0, %c0_i32 : i32, i32
  }
}

</mosaic_0001>

<bundles_post_ra>
// kernel: tpu_custom_call.1
= control target key start
LH: loop header
LB: loop body
LE: loop exit
PB: predicated region body
PF: predicated region fallthrough
CT: control target
= control target key end

     0   :  { %s2924_s0 = inlined_call_operand.vmem [shape: s32[64,1], index: 0, kind: input, shape index: {}]   ;;  %s2925_s1 = inlined_call_operand.vmem [shape: f32[32,256], index: 1, kind: input, shape index: {}]   ;;  %s2926_s2 = inlined_call_operand.vmem [shape: f32[1,256], index: 2, kind: input, shape index: {}]   ;;  %s2927_s3 = inlined_call_operand.hbm [shape: bf16[8,64,288], index: 3, kind: input, shape index: {}]   ;;  %s2928_s4 = inlined_call_operand.vmem [shape: f32[1,32], index: 4, kind: input, shape index: {}]   ;;  %s2929_s5 = inlined_call_operand.vmem [shape: f32[1,32], index: 5, kind: input, shape index: {}]   ;;  %s2930_s6 = inlined_call_operand.<no memory space> [shape: f32[1,1], index: 6, kind: input, shape index: {}]   ;;  %s2931_s7 = inlined_call_operand.vmem [shape: f32[8,1], index: 7, kind: output, shape index: {}]  }
   0x1   :  { %v12_v0 = vstv %s2930_s6 }
   0x2   :  { %13 = vst [vmem:[#allocation2] sm:$0x1] %v12_v0 }
   0x3   :  { %14 = vsyncpa [#allocation4], 0  ;;  %s25_s28 = sshll.u32 %s2927_s3, 4  ;;  %s2547_s29 = smov [#allocation3]   ;;  %s26_s28 = int_to_ptr.hbm [resolvable:$true] %s25_s28 }
   0x4   :  { %s27_s30 = sshll.u32 %s2547_s29, 4  ;;  %s2548_s8 = smov 192   ;;  %s28_s30 = int_to_ptr.vmem [resolvable:$true] %s27_s30 }
   0x5   :  { %s2549_s9 = smov 12  }
   0x6   :  { %33 = dma.hbm_to_vmem [thread:$0]  %s26_s28, 12288, %s28_s30, [#allocation4], %s2548_s8, %s2548_s8, %s2549_s9  }
   0x7   :  { %2545 = dma.done.wait [#allocation4], 12288  }
   0x8   :  { %2546 = vsyncadd [#allocation4], 4294955008  ;;  %v2550_v1 = vmov 0   ;;  %v47_v2 = vld [vmem:[%s2924_s0 + $0x10] sm:$0xff]  ;;  %v45_v3 = vld [vmem:[%s2924_s0] sm:$0xff]  ;;  %v53_v18 = vlaneseq  ;;  %vm117_vm0 = vcmask 261120  }
   0x9   :  { %2416 = vset.pattern.permute.xlu1 %v2550_v1  ;;  %2415 = vset.pattern.permute.xlu0 %v2550_v1  ;;  %v49_v4 = vld [vmem:[%s2924_s0 + $0x20] sm:$0xff]  ;;  %v109_v5 = vld [vmem:[%s2925_s1 + $0x30] sm:$0xff]  ;;  %v110_v6 = vld [vmem:[%s2925_s1 + $0x38] sm:$0xff]  ;;  %v2551_v21 = vmov 0.0   ;;  %s2553_s15 = smov 32  }
   0xa   :  { %2417 = vset.pattern.permute.xlu2 %v2550_v1  ;;  %62 = vperm.xlu1 %2416, %v47_v2   ;;  %v107_v7 = vld [vmem:[%s2925_s1 + $0x20] sm:$0xff]  ;;  %v108_v8 = vld [vmem:[%s2925_s1 + $0x28] sm:$0xff]  ;;  %v105_v9 = vld [vmem:[%s2925_s1 + $0x10] sm:$0xff]  ;;  %v54_v19 = vand.u32 127, %v53_v18 }
   0xb   :  { %56 = vperm.xlu0 %2415, %v45_v3   ;;  %68 = vperm.xlu2 %2417, %v49_v4   ;;  %v106_v10 = vld [vmem:[%s2925_s1 + $0x18] sm:$0xff]  ;;  %v46_v12 = vld [vmem:[%s2924_s0 + $0x8] sm:$0xff]  ;;  %v51_v15 = vld [vmem:[%s2924_s0 + $0x30] sm:$0xff] }
   0xc   :  { %154 = vmatpush.msra.mxu0 %v109_v5  ;;  %195 = vmatpush.msra.mxu1 %v110_v6  ;;  %v48_v11 = vld [vmem:[%s2924_s0 + $0x18] sm:$0xff]  ;;  %v50_v13 = vld [vmem:[%s2924_s0 + $0x28] sm:$0xff]  ;;  %v103_v16 = vld [vmem:[%s2925_s1] sm:$0xff] }
   0xd   :  { %v52_v14 = vld [vmem:[%s2924_s0 + $0x38] sm:$0xff]  ;;  %v104_v17 = vld [vmem:[%s2925_s1 + $0x8] sm:$0xff]  ;;  %v111_v37 = vld [vmem:[%s2926_s2] sm:$0x3]  ;;  %s2552_s2 = smov 64  }
   0xe   :  { %155 = vmatpush.msra.mxu0 %v107_v7  ;;  %196 = vmatpush.msra.mxu1 %v108_v8  ;;  %v2667_v38 = vperm.slane %v111_v37, 0  ;;  %v114_v39 = vperm.slane %v111_v37, 1 }
  0x10   :  { %156 = vmatpush.msra.mxu0 %v105_v9  ;;  %197 = vmatpush.msra.mxu1 %v106_v10 }
  0x12   :  { %65 = vperm.xlu1 %2416, %v48_v11   ;;  %157 = vmatpush.msra.mxu0 %v103_v16 }
  0x13   :  { %59 = vperm.xlu0 %2415, %v46_v12   ;;  %71 = vperm.xlu2 %2417, %v50_v13  }
  0x14   :  { %198 = vmatpush.msra.mxu1 %v104_v17 }
  0x1a   :  { %77 = vperm.xlu1 %2416, %v52_v14  }
  0x1b   :  { %74 = vperm.xlu0 %2415, %v51_v15  }
  0x65   :  { %v69_v29 = vpop.permute.xlu2 %68 }
  0x66   :  { %vm83_vm5 = vcmp.eq.s32.totalorder %v54_v19, %v69_v29 }
  0x67   :  { %v1893_v30 = vsel %vm83_vm5, 1.0, %v2551_v21 }
  0x6d   :  { %v72_v31 = vpop.permute.xlu2 %71 }
  0x6e   :  { %vm84_vm6 = vcmp.eq.s32.totalorder %v54_v19, %v72_v31 }
  0x6f   :  { %v1894_v32 = vsel %vm84_vm6, 1.0, %v2551_v21 }
  0x7c   :  { %v63_v25 = vpop.permute.xlu1 %62 }
  0x7d   :  { %v57_v20 = vpop.permute.xlu0 %56  ;;  %vm81_vm3 = vcmp.eq.s32.totalorder %v54_v19, %v63_v25 }
  0x7e   :  { %vm79_vm1 = vcmp.eq.s32.totalorder %v54_v19, %v57_v20  ;;  %v1891_v26 = vsel %vm81_vm3, 1.0, %v2551_v21 }
  0x7f   :  { %v1889_v22 = vsel %vm79_vm1, 1.0, %v2551_v21 }
  0x80   :  { %1897 = vmatmul.msk.f32.vlgmr.msra.gmra.mxu0 %vm117_vm0, %v1889_v22  ;;  %1905 = vmatmul.msk.f32.vlgmr.msra.gmra.mxu1 %vm117_vm0, %v1889_v22 }
  0x84   :  { %v66_v27 = vpop.permute.xlu1 %65 }
  0x85   :  { %v60_v23 = vpop.permute.xlu0 %59  ;;  %vm82_vm4 = vcmp.eq.s32.totalorder %v54_v19, %v66_v27 }
  0x86   :  { %vm80_vm2 = vcmp.eq.s32.totalorder %v54_v19, %v60_v23  ;;  %v1892_v28 = vsel %vm82_vm4, 1.0, %v2551_v21 }
  0x87   :  { %v1890_v24 = vsel %vm80_vm2, 1.0, %v2551_v21  ;;  %vm390_vm2 = vcmask 523264  }
  0x88   :  { %1898 = vmatmul.msk.f32.gmra.mxu0 %vm117_vm0, %v1890_v24  ;;  %1906 = vmatmul.msk.f32.gmra.mxu1 %vm117_vm0, %v1890_v24 }
  0x8c   :  { %v78_v35 = vpop.permute.xlu1 %77 }
  0x8d   :  { %v75_v33 = vpop.permute.xlu0 %74  ;;  %vm86_vm8 = vcmp.eq.s32.totalorder %v54_v19, %v78_v35 }
  0x8e   :  { %vm85_vm7 = vcmp.eq.s32.totalorder %v54_v19, %v75_v33  ;;  %v1896_v36 = vsel %vm86_vm8, 1.0, %v2551_v21 }
  0x8f   :  { %v1895_v34 = vsel %vm85_vm7, 1.0, %v2551_v21 }
  0x90   :  { %1899 = vmatmul.msk.f32.gmra.mxu0 %vm117_vm0, %v1891_v26  ;;  %1907 = vmatmul.msk.f32.gmra.mxu1 %vm117_vm0, %v1891_v26 }
  0x98   :  { %1900 = vmatmul.msk.f32.gmra.mxu0 %vm117_vm0, %v1892_v28  ;;  %1908 = vmatmul.msk.f32.gmra.mxu1 %vm117_vm0, %v1892_v28 }
  0xa0   :  { %1901 = vmatmul.msk.f32.gmra.mxu0 %vm117_vm0, %v1893_v30  ;;  %1909 = vmatmul.msk.f32.gmra.mxu1 %vm117_vm0, %v1893_v30 }
  0xa8   :  { %1902 = vmatmul.msk.f32.gmra.mxu0 %vm117_vm0, %v1894_v32  ;;  %1910 = vmatmul.msk.f32.gmra.mxu1 %vm117_vm0, %v1894_v32 }
  0xb0   :  { %1903 = vmatmul.msk.f32.gmra.mxu0 %vm117_vm0, %v1895_v34  ;;  %1911 = vmatmul.msk.f32.gmra.mxu1 %vm117_vm0, %v1895_v34 }
  0xb8   :  { %1904 = vmatmul.msk.f32.gmra.mxu0 %vm117_vm0, %v1896_v36  ;;  %1912 = vmatmul.msk.f32.gmra.mxu1 %vm117_vm0, %v1896_v36 }
  0xfd   :  { %v159_v40 = vpop.f32.mrf.mxu0  ;;  %v200_v41 = vpop.f32.mrf.mxu1 }
  0xfe   :  { %v160_v42 = vadd.f32 %v159_v40, %v2667_v38  ;;  %v2670_v43 = vadd.f32 %v200_v41, %v114_v39 }
 0x100   :  { %v1913_v44 = vmul.f32 -1.442695, %v160_v42 }
 0x102   :  { %2421 = vpow2.f32 %v1913_v44 }
 0x105   :  { %v2672_v45 = vpop.f32.mrf.mxu0  ;;  %v203_v46 = vpop.f32.mrf.mxu1 }
 0x106   :  { %v2674_v47 = vadd.f32 %v203_v46, %v114_v39 }
 0x108   :  { %v2422_v48 = vpop.eup %2421 }
 0x109   :  { %v227_v49 = vadd.f32 1.0, %v2422_v48 }
 0x10b   :  { %2423 = vrcp.f32 %v227_v49  ;;  %v239_v58 = vand.u32 2147483648, %v227_v49  ;;  %v237_v61 = vand.u32 2147483647, %v227_v49  ;;  %vm233_vm10 = vweird.f32 %v227_v49 }
 0x10d   :  { %v2676_v50 = vpop.f32.mrf.mxu0  ;;  %v206_v51 = vpop.f32.mrf.mxu1  ;;  %v240_v63 = vor.u32 1.1754944e-38, %v239_v58  ;;  %vm238_vm12 = vcmp.eq.f32.partialorder %v237_v61, 8.507059e+37  ;;  %v2329_v58 = vld [vmem:[#allocation3 + $0x4c] sm:$0xf]  ;;  %v1957_v61 = vld [vmem:[#allocation3 + $0x54] sm:$0xf0] }
 0x10e   :  { %v2678_v52 = vadd.f32 %v206_v51, %v114_v39 }
 0x111   :  { %v2424_v53 = vpop.eup %2423 }
 0x112   :  { %v229_v54 = vmul.f32 %v2424_v53, %v227_v49  ;;  %vm234_vm9 = vweird.f32 %v2424_v53 }
 0x113   :  { %vm235_vm11 = vmor %vm233_vm10, %vm234_vm9 }
 0x114   :  { %v230_v55 = vsub.f32 1.0, %v229_v54 }
 0x115   :  { %v2680_v56 = vpop.f32.mrf.mxu0  ;;  %v209_v57 = vpop.f32.mrf.mxu1 }
 0x116   :  { %v2682_v59 = vadd.f32 %v209_v57, %v114_v39  ;;  %v231_v60 = vmul.f32 %v2424_v53, %v230_v55  ;;  %v1955_v55 = vld [vmem:[#allocation3 + $0x48] sm:$0xf]  ;;  %v2330_v57 = vld [vmem:[#allocation3 + $0x50] sm:$0xf0] }
 0x118   :  { %v232_v62 = vadd.f32 %v2424_v53, %v231_v60  ;;  %v1956_v60 = vor.u32 %v2330_v57, %v1955_v55 }
 0x11a   :  { %v236_v0 = vsel %vm235_vm11, %v2424_v53, %v232_v62  ;;  %v1943_v62 = vld [vmem:[#allocation3 + $0x30] sm:$0xf]  ;;  %398 = vmatpush.bf16.msra.mxu2 %v1956_v60 }
 0x11b   :  { %v241_v1 = vsel %vm238_vm12, %v240_v63, %v236_v0  ;;  %v2327_v63 = vld [vmem:[#allocation3 + $0x38] sm:$0xf0]  ;;  %v1960_v0 = vor.u32 %v2329_v58, %v1957_v61 }
 0x11c   :  { %v243_v2 = vmul.f32 2.0, %v241_v1  ;;  %v245_v37 = vmul.f32 0.0, %v241_v1 }
 0x11d   :  { %v171_v3 = vpop.f32.mrf.mxu0  ;;  %v212_v4 = vpop.f32.mrf.mxu1  ;;  %411 = vmatpush.bf16.msra.mxu3 %v1960_v0 }
 0x11e   :  { %v2685_v5 = vadd.f32 %v171_v3, %v2667_v38  ;;  %v2687_v6 = vadd.f32 %v212_v4, %v114_v39  ;;  %v1914_v7 = vadd.f32 -1.0, %v243_v2  ;;  %v2326_v2 = vld [vmem:[#allocation3 + $0x34] sm:$0xf]  ;;  %v1945_v3 = vld [vmem:[#allocation3 + $0x3c] sm:$0xf0]  ;;  %v1944_v4 = vor.u32 %v2327_v63, %v1943_v62 }
 0x120   :  { %247 = vrot.lane.b32.xlu2 %v1914_v7, %s2552_s2  ;;  %v1931_v7 = vld [vmem:[#allocation3 + $0x18] sm:$0xf]  ;;  %399 = vmatpush.bf16.msra.mxu2 %v1944_v4 }
 0x125   :  { %v174_v8 = vpop.f32.mrf.mxu0  ;;  %v215_v9 = vpop.f32.mrf.mxu1 }
 0x126   :  { %v2691_v10 = vadd.f32 %v174_v8, %v2667_v38  ;;  %v2693_v11 = vadd.f32 %v215_v9, %v114_v39  ;;  %v2324_v8 = vld [vmem:[#allocation3 + $0x20] sm:$0xf0]  ;;  %v2323_v9 = vld [vmem:[#allocation3 + $0x1c] sm:$0xf] }
 0x12d   :  { %v177_v12 = vpop.f32.mrf.mxu0  ;;  %v218_v13 = vpop.f32.mrf.mxu1 }
 0x12e   :  { %v2696_v14 = vadd.f32 %v177_v12, %v2667_v38  ;;  %v2698_v15 = vadd.f32 %v218_v13, %v114_v39  ;;  %v1933_v12 = vld [vmem:[#allocation3 + $0x24] sm:$0xf0]  ;;  %v1932_v13 = vor.u32 %v2324_v8, %v1931_v7 }
 0x130   :  { %400 = vmatpush.bf16.msra.mxu2 %v1932_v13 }
 0x135   :  { %v221_v16 = vpop.f32.mrf.mxu1 }
 0x136   :  { %v222_v17 = vadd.f32 %v221_v16, %v114_v39  ;;  %v1936_v16 = vor.u32 %v2323_v9, %v1933_v12 }
 0x138   :  { %v1915_v18 = vmul.f32 -1.442695, %v222_v17  ;;  %v1919_v17 = vld [vmem:[#allocation3] sm:$0xf] }
 0x13a   :  { %2425 = vpow2.f32 %v1915_v18  ;;  %v2321_v18 = vld [vmem:[#allocation3 + $0x8] sm:$0xf0] }
 0x140   :  { %v2426_v19 = vpop.eup %2425 }
 0x141   :  { %v265_v20 = vadd.f32 1.0, %v2426_v19  ;;  %v2320_v19 = vld [vmem:[#allocation3 + $0x4] sm:$0xf] }
 0x143   :  { %2427 = vrcp.f32 %v265_v20  ;;  %v277_v24 = vand.u32 2147483648, %v265_v20  ;;  %v275_v26 = vand.u32 2147483647, %v265_v20  ;;  %vm271_vm14 = vweird.f32 %v265_v20 }
 0x145   :  { %v278_v28 = vor.u32 1.1754944e-38, %v277_v24  ;;  %vm276_vm1 = vcmp.eq.f32.partialorder %v275_v26, 8.507059e+37  ;;  %v2331_v24 = vld [vmem:[#allocation3 + $0x58] sm:$0xf0]  ;;  %v1951_v26 = vld [vmem:[#allocation3 + $0x38] sm:$0xf] }
 0x149   :  { %v2428_v21 = vpop.eup %2427 }
 0x14a   :  { %v267_v22 = vmul.f32 %v2428_v21, %v265_v20  ;;  %vm272_vm13 = vweird.f32 %v2428_v21  ;;  %v1920_v20 = vor.u32 %v2321_v18, %v1919_v17 }
 0x14b   :  { %vm273_vm15 = vmor %vm271_vm14, %vm272_vm13 }
 0x14c   :  { %v268_v23 = vsub.f32 1.0, %v267_v22  ;;  %401 = vmatpush.bf16.msra.mxu2 %v1920_v20 }
 0x14e   :  { %v269_v25 = vmul.f32 %v2428_v21, %v268_v23  ;;  %v1963_v23 = vld [vmem:[#allocation3 + $0x50] sm:$0xf] }
 0x150   :  { %v270_v27 = vadd.f32 %v2428_v21, %v269_v25  ;;  %v1964_v25 = vor.u32 %v2331_v24, %v1963_v23 }
 0x152   :  { %v274_v29 = vsel %vm273_vm15, %v2428_v21, %v270_v27  ;;  %v1921_v21 = vld [vmem:[#allocation3 + $0xc] sm:$0xf0]  ;;  %v2328_v27 = vld [vmem:[#allocation3 + $0x40] sm:$0xf0]  ;;  %424 = vmatpush.bf16.msrb.mxu2 %v1964_v25 }
 0x153   :  { %v279_v30 = vsel %vm276_vm1, %v278_v28, %v274_v29  ;;  %v1924_v22 = vor.u32 %v2320_v19, %v1921_v21  ;;  %v1952_v28 = vor.u32 %v2328_v27, %v1951_v26  ;;  %v1939_v29 = vld [vmem:[#allocation3 + $0x20] sm:$0xf] }
 0x154   :  { %v281_v31 = vmul.f32 2.0, %v279_v30  ;;  %v283_v42 = vmul.f32 0.0, %v279_v30 }
 0x156   :  { %v1916_v32 = vadd.f32 -1.0, %v281_v31  ;;  %425 = vmatpush.bf16.msrb.mxu2 %v1952_v28 }
 0x158   :  { %285 = vrot.lane.b32.xlu0 %v1916_v32, %s2552_s2  ;;  %v1927_v32 = vld [vmem:[#allocation3 + $0x8] sm:$0xf] }
 0x17a   :  { %v248_v33 = vpop.permute.xlu2 %247 }
 0x17b   :  { %v250_v34 = vmul.f32 %v248_v33, %v241_v1  ;;  %v2322_v33 = vld [vmem:[#allocation3 + $0x10] sm:$0xf0] }
 0x17d   :  { %252 = vrot.lane.b32.xlu1 %v250_v34, %s2553_s15  ;;  %v1928_v34 = vor.u32 %v2322_v33, %v1927_v32 }
 0x1ca   :  { %v286_v35 = vpop.permute.xlu0 %285 }
 0x1cb   :  { %v288_v36 = vmul.f32 %v286_v35, %v279_v30 }
 0x1cd   :  { %290 = vrot.lane.b32.xlu2 %v288_v36, %s2553_s15 }
 0x1ef   :  { %v253_v39 = vpop.permute.xlu1 %252 }
 0x1f0   :  { %v2703_v40 = vadd.f32 %v253_v39, %v245_v37 }
 0x1f2   :  { %2429 = vtanh.f32 %v2703_v40 }
 0x1f8   :  { %v2430_v41 = vpop.eup %2429 }
 0x1f9   :  { %258 = vrot.lane.b32.xlu0 %v2430_v41, %s2552_s2  ;;  %v163_v41 = vadd.f32 %v2672_v45, %v2667_v38 }
 0x227   :  { %v291_v44 = vpop.permute.xlu2 %290 }
 0x228   :  { %v2707_v46 = vadd.f32 %v291_v44, %v283_v42 }
 0x22a   :  { %2431 = vtanh.f32 %v2707_v46 }
 0x230   :  { %v2432_v48 = vpop.eup %2431 }
 0x231   :  { %296 = vrot.lane.b32.xlu1 %v2432_v48, %s2552_s2 }
 0x26b   :  { %v259_v49 = vpop.permute.xlu0 %258 }
 0x26c   :  { %v261_v51 = vmul.f32 %v259_v49, %v241_v1  ;;  %v1948_v1 = vor.u32 %v2326_v2, %v1945_v3 }
 0x26e   :  { %301 = vrot.lane.b32.xlu2 %v261_v51, %s2553_s15  ;;  %412 = vmatpush.bf16.msra.mxu3 %v1948_v1 }
 0x272   :  { %413 = vmatpush.bf16.msra.mxu3 %v1936_v16 }
 0x276   :  { %414 = vmatpush.bf16.msra.mxu3 %v1924_v22 }
 0x2a3   :  { %v297_v53 = vpop.permute.xlu1 %296 }
 0x2a4   :  { %v299_v54 = vmul.f32 %v297_v53, %v279_v30  ;;  %v2325_v30 = vld [vmem:[#allocation3 + $0x28] sm:$0xf0] }
 0x2a5   :  { %v1940_v31 = vor.u32 %v2325_v30, %v1939_v29 }
 0x2a6   :  { %305 = vrot.lane.b32.xlu0 %v299_v54, %s2552_s2 }
 0x2a7   :  { %426 = vmatpush.bf16.msrb.mxu2 %v1940_v31 }
 0x2ab   :  { %427 = vmatpush.bf16.msrb.mxu2 %v1928_v34 }
 0x2c8   :  { %v302_v35 = vpop.permute.xlu2 %301 }
 0x318   :  { %v306_v36 = vpop.permute.xlu0 %305 }
 0x319   :  { %v308_v37 = vsel %vm117_vm0, %v302_v35, %v306_v36 }
 0x31a   :  { %v309_v39 = vpack.c.bf16 %v308_v37, %v308_v37 }
 0x31c   :  { %1965 = vmatmul.msk.bf16.vlgmr.msra.gmra.mxu2 %vm390_vm2, %v309_v39  ;;  %1966 = vmatmul.msk.bf16.vlgmr.msra.gmra.mxu3 %vm390_vm2, %v309_v39 }
 0x32c   :  { %1967 = vmatmul.msk.bf16.vlgmr.msrb.gmra.mxu2 %vm390_vm2, %v309_v39 }
 0x39f   :  { %v403_v42 = vpop.f32.mrf.mxu2  ;;  %v416_v44 = vpop.f32.mrf.mxu3 }
 0x3a0   :  { %v434_v48 = vadd.f32 %v403_v42, %v163_v41  ;;  %v435_v49 = vadd.f32 %v416_v44, %v2698_v15 }
 0x3a2   :  { %v1968_v51 = vmul.f32 -1.442695, %v434_v48  ;;  %v1970_v53 = vmul.f32 -1.442695, %v435_v49  ;;  %v2010_v49 = vld [vmem:[#allocation3 + $0xa8] sm:$0xf] }
 0x3a4   :  { %2433 = vpow2.f32 %v1968_v51  ;;  %v2342_v51 = vld [vmem:[#allocation3 + $0xb0] sm:$0xf0] }
 0x3a5   :  { %2435 = vpow2.f32 %v1970_v53  ;;  %v2341_v53 = vld [vmem:[#allocation3 + $0xac] sm:$0xf] }
 0x3a7   :  { %v405_v54 = vpop.f32.mrf.mxu2  ;;  %v418_v55 = vpop.f32.mrf.mxu3 }
 0x3a8   :  { %v2012_v54 = vld [vmem:[#allocation3 + $0xb4] sm:$0xf0]  ;;  %v1998_v55 = vld [vmem:[#allocation3 + $0x90] sm:$0xf] }
 0x3aa   :  { %v2434_v57 = vpop.eup %2433 }
 0x3ab   :  { %v2436_v58 = vpop.eup %2435  ;;  %v439_v60 = vadd.f32 1.0, %v2434_v57  ;;  %v2339_v57 = vld [vmem:[#allocation3 + $0x98] sm:$0xf0] }
 0x3ac   :  { %v477_v61 = vadd.f32 1.0, %v2436_v58  ;;  %v2015_v58 = vor.u32 %v2341_v53, %v2012_v54 }
 0x3ad   :  { %2437 = vrcp.f32 %v439_v60  ;;  %v451_v1 = vand.u32 2147483648, %v439_v60  ;;  %v449_v8 = vand.u32 2147483647, %v439_v60  ;;  %vm445_vm5 = vweird.f32 %v439_v60 }
 0x3ae   :  { %2439 = vrcp.f32 %v477_v61  ;;  %v489_v9 = vand.u32 2147483648, %v477_v61  ;;  %v487_v13 = vand.u32 2147483647, %v477_v61  ;;  %vm483_vm7 = vweird.f32 %v477_v61  ;;  %623 = vmatpush.bf16.msra.mxu2 %v2015_v58 }
 0x3af   :  { %v2720_v62 = vpop.f32.mrf.mxu2  ;;  %v452_v17 = vor.u32 1.1754944e-38, %v451_v1  ;;  %vm450_vm8 = vcmp.eq.f32.partialorder %v449_v8, 8.507059e+37  ;;  %v2333_v8 = vld [vmem:[#allocation3 + $0x68] sm:$0xf0] }
 0x3b0   :  { %v490_v20 = vor.u32 1.1754944e-38, %v489_v9  ;;  %vm488_vm10 = vcmp.eq.f32.partialorder %v487_v13, 8.507059e+37  ;;  %v2332_v9 = vld [vmem:[#allocation3 + $0x64] sm:$0xf] }
 0x3b3   :  { %v2438_v45 = vpop.eup %2437 }
 0x3b4   :  { %v2440_v63 = vpop.eup %2439  ;;  %v441_v0 = vmul.f32 %v2438_v45, %v439_v60  ;;  %vm446_vm3 = vweird.f32 %v2438_v45  ;;  %v2338_v60 = vld [vmem:[#allocation3 + $0x94] sm:$0xf] }
 0x3b5   :  { %v479_v2 = vmul.f32 %v2440_v63, %v477_v61  ;;  %vm484_vm4 = vweird.f32 %v2440_v63  ;;  %vm447_vm6 = vmor %vm445_vm5, %vm446_vm3  ;;  %v2000_v61 = vld [vmem:[#allocation3 + $0x9c] sm:$0xf0] }
 0x3b6   :  { %v442_v3 = vsub.f32 1.0, %v441_v0  ;;  %vm485_vm9 = vmor %vm483_vm7, %vm484_vm4  ;;  %v1986_v0 = vld [vmem:[#allocation3 + $0x78] sm:$0xf] }
 0x3b7   :  { %v480_v15 = vsub.f32 1.0, %v479_v2  ;;  %v431_v4 = vpop.f32.mrf.mxu2  ;;  %v2336_v2 = vld [vmem:[#allocation3 + $0x80] sm:$0xf0] }
 0x3b8   :  { %v443_v7 = vmul.f32 %v2438_v45, %v442_v3  ;;  %v2335_v3 = vld [vmem:[#allocation3 + $0x7c] sm:$0xf]  ;;  %v1987_v4 = vor.u32 %v2336_v2, %v1986_v0 }
 0x3b9   :  { %v481_v12 = vmul.f32 %v2440_v63, %v480_v15  ;;  %v1988_v15 = vld [vmem:[#allocation3 + $0x84] sm:$0xf0] }
 0x3ba   :  { %v444_v16 = vadd.f32 %v2438_v45, %v443_v7  ;;  %v1991_v1 = vor.u32 %v2335_v3, %v1988_v15  ;;  %v1974_v7 = vld [vmem:[#allocation3 + $0x60] sm:$0xf] }
 0x3bb   :  { %v482_v18 = vadd.f32 %v2440_v63, %v481_v12  ;;  %v1976_v12 = vld [vmem:[#allocation3 + $0x6c] sm:$0xf0]  ;;  %v1975_v13 = vor.u32 %v2333_v8, %v1974_v7 }
 0x3bc   :  { %v448_v19 = vsel %vm447_vm6, %v2438_v45, %v444_v16  ;;  %v1999_v45 = vor.u32 %v2339_v57, %v1998_v55  ;;  %v1979_v16 = vor.u32 %v2332_v9, %v1976_v12 }
 0x3bd   :  { %v453_v21 = vsel %vm450_vm8, %v452_v17, %v448_v19  ;;  %v486_v22 = vsel %vm485_vm9, %v2440_v63, %v482_v18  ;;  %v2003_v63 = vor.u32 %v2338_v60, %v2000_v61  ;;  %v2018_v17 = vld [vmem:[#allocation3 + $0xb0] sm:$0xf]  ;;  %v2343_v18 = vld [vmem:[#allocation3 + $0xb8] sm:$0xf0] }
 0x3be   :  { %v455_v23 = vmul.f32 2.0, %v453_v21  ;;  %v491_v24 = vsel %vm488_vm10, %v490_v20, %v486_v22  ;;  %v457_v36 = vmul.f32 %v453_v21, %v2703_v40  ;;  %v2011_v40 = vor.u32 %v2342_v51, %v2010_v49  ;;  %v2006_v20 = vld [vmem:[#allocation3 + $0x98] sm:$0xf] }
 0x3bf   :  { %v493_v25 = vmul.f32 2.0, %v491_v24  ;;  %v495_v32 = vmul.f32 %v491_v24, %v2707_v46  ;;  %624 = vmatpush.bf16.msra.mxu2 %v2003_v63  ;;  %v2019_v19 = vor.u32 %v2343_v18, %v2018_v17 }
 0x3c0   :  { %v1969_v26 = vadd.f32 -1.0, %v455_v23  ;;  %610 = vmatpush.bf16.msrb.mxu3 %v2011_v40  ;;  %v1994_v23 = vld [vmem:[#allocation3 + $0x80] sm:$0xf] }
 0x3c1   :  { %v1971_v27 = vadd.f32 -1.0, %v493_v25 }
 0x3c2   :  { %459 = vrot.lane.b32.xlu1 %v1969_v26, %s2552_s2  ;;  %v1982_v26 = vld [vmem:[#allocation3 + $0x68] sm:$0xf] }
 0x3c3   :  { %497 = vrot.lane.b32.xlu2 %v1971_v27, %s2552_s2  ;;  %625 = vmatpush.bf16.msra.mxu2 %v1991_v1  ;;  %v2334_v27 = vld [vmem:[#allocation3 + $0x70] sm:$0xf0] }
 0x3c4   :  { %611 = vmatpush.bf16.msrb.mxu3 %v1999_v45 }
 0x3c7   :  { %626 = vmatpush.bf16.msra.mxu2 %v1979_v16 }
 0x3c8   :  { %612 = vmatpush.bf16.msrb.mxu3 %v1987_v4 }
 0x3cc   :  { %613 = vmatpush.bf16.msrb.mxu3 %v1975_v13 }
 0x3d0   :  { %636 = vmatpush.bf16.msra.mxu3 %v2019_v19 }
 0x41d   :  { %v498_v28 = vpop.permute.xlu2 %497 }
 0x41e   :  { %v500_v29 = vmul.f32 %v498_v28, %v491_v24  ;;  %v1983_v28 = vor.u32 %v2334_v27, %v1982_v26 }
 0x420   :  { %502 = vrot.lane.b32.xlu1 %v500_v29, %s2553_s15 }
 0x434   :  { %v460_v30 = vpop.permute.xlu1 %459 }
 0x435   :  { %v462_v31 = vmul.f32 %v460_v30, %v453_v21 }
 0x437   :  { %464 = vrot.lane.b32.xlu0 %v462_v31, %s2553_s15 }
 0x492   :  { %v503_v33 = vpop.permute.xlu1 %502 }
 0x493   :  { %v2727_v34 = vadd.f32 %v503_v33, %v495_v32  ;;  %v166_v33 = vadd.f32 %v2676_v50, %v2667_v38 }
 0x495   :  { %2441 = vtanh.f32 %v2727_v34 }
 0x49b   :  { %v2442_v35 = vpop.eup %2441 }
 0x49c   :  { %508 = vrot.lane.b32.xlu0 %v2442_v35, %s2552_s2 }
 0x4a9   :  { %v465_v37 = vpop.permute.xlu0 %464 }
 0x4aa   :  { %v2732_v39 = vadd.f32 %v465_v37, %v457_v36 }
 0x4ac   :  { %2443 = vtanh.f32 %v2732_v39 }
 0x4b2   :  { %v2444_v41 = vpop.eup %2443 }
 0x4b3   :  { %470 = vrot.lane.b32.xlu2 %v2444_v41, %s2552_s2 }
 0x50d   :  { %v471_v42 = vpop.permute.xlu2 %470 }
 0x50e   :  { %v509_v46 = vpop.permute.xlu0 %508  ;;  %v473_v44 = vmul.f32 %v471_v42, %v453_v21  ;;  %v2340_v21 = vld [vmem:[#allocation3 + $0xa0] sm:$0xf0] }
 0x50f   :  { %v511_v48 = vmul.f32 %v509_v46, %v491_v24  ;;  %v2007_v22 = vor.u32 %v2340_v21, %v2006_v20  ;;  %v2337_v24 = vld [vmem:[#allocation3 + $0x88] sm:$0xf0] }
 0x510   :  { %513 = vrot.lane.b32.xlu1 %v473_v44, %s2553_s15  ;;  %v1995_v25 = vor.u32 %v2337_v24, %v1994_v23 }
 0x511   :  { %517 = vrot.lane.b32.xlu2 %v511_v48, %s2552_s2  ;;  %637 = vmatpush.bf16.msra.mxu3 %v2007_v22 }
 0x515   :  { %638 = vmatpush.bf16.msra.mxu3 %v1995_v25 }
 0x519   :  { %639 = vmatpush.bf16.msra.mxu3 %v1983_v28 }
 0x56b   :  { %v518_v29 = vpop.permute.xlu2 %517 }
 0x582   :  { %v514_v30 = vpop.permute.xlu1 %513 }
 0x583   :  { %v520_v31 = vsel %vm117_vm0, %v514_v30, %v518_v29 }
 0x584   :  { %v521_v32 = vpack.c.bf16 %v520_v31, %v520_v31 }
 0x586   :  { %2020 = vmatmul.msk.bf16.vlgmr.msrb.gmra.mxu3 %vm390_vm2, %v521_v32  ;;  %2021 = vmatmul.msk.bf16.vlgmr.msra.gmra.mxu2 %vm390_vm2, %v521_v32 }
 0x596   :  { %2022 = vmatmul.msk.bf16.vlgmr.msra.gmra.mxu3 %vm390_vm2, %v521_v32 }
 0x609   :  { %v615_v35 = vpop.f32.mrf.mxu3  ;;  %v628_v36 = vpop.f32.mrf.mxu2 }
 0x60a   :  { %v646_v37 = vadd.f32 %v615_v35, %v166_v33  ;;  %v647_v41 = vadd.f32 %v628_v36, %v2693_v11  ;;  %v2067_v33 = vld [vmem:[#allocation3 + $0x114] sm:$0xf0]  ;;  %v2065_v35 = vld [vmem:[#allocation3 + $0x108] sm:$0xf] }
 0x60c   :  { %v2023_v42 = vmul.f32 -1.442695, %v646_v37  ;;  %v2025_v46 = vmul.f32 -1.442695, %v647_v41  ;;  %v2354_v37 = vld [vmem:[#allocation3 + $0x110] sm:$0xf0] }
 0x60d   :  { %v2073_v41 = vld [vmem:[#allocation3 + $0x110] sm:$0xf] }
 0x60e   :  { %2445 = vpow2.f32 %v2023_v42  ;;  %v2355_v42 = vld [vmem:[#allocation3 + $0x118] sm:$0xf0] }
 0x60f   :  { %2447 = vpow2.f32 %v2025_v46  ;;  %v2066_v46 = vor.u32 %v2354_v37, %v2065_v35 }
 0x611   :  { %v617_v44 = vpop.f32.mrf.mxu3  ;;  %v630_v48 = vpop.f32.mrf.mxu2  ;;  %822 = vmatpush.bf16.msrb.mxu2 %v2066_v46 }
 0x612   :  { %v2074_v44 = vor.u32 %v2355_v42, %v2073_v41  ;;  %v2350_v48 = vld [vmem:[#allocation3 + $0xf4] sm:$0xf] }
 0x614   :  { %v2446_v49 = vpop.eup %2445  ;;  %848 = vmatpush.bf16.msrb.mxu0 %v2074_v44 }
 0x615   :  { %v2448_v51 = vpop.eup %2447  ;;  %v651_v53 = vadd.f32 1.0, %v2446_v49  ;;  %v2055_v49 = vld [vmem:[#allocation3 + $0xfc] sm:$0xf0] }
 0x616   :  { %v689_v40 = vadd.f32 1.0, %v2448_v51  ;;  %v2058_v51 = vor.u32 %v2350_v48, %v2055_v49 }
 0x617   :  { %2449 = vrcp.f32 %v651_v53  ;;  %v663_v45 = vand.u32 2147483648, %v651_v53  ;;  %v661_v2 = vand.u32 2147483647, %v651_v53  ;;  %vm657_vm13 = vweird.f32 %v651_v53 }
 0x618   :  { %2451 = vrcp.f32 %v689_v40  ;;  %v701_v63 = vand.u32 2147483648, %v689_v40  ;;  %v699_v15 = vand.u32 2147483647, %v689_v40  ;;  %vm695_vm14 = vweird.f32 %v689_v40 }
 0x619   :  { %v2745_v54 = vpop.f32.mrf.mxu3  ;;  %v664_v7 = vor.u32 1.1754944e-38, %v663_v45  ;;  %vm662_vm3 = vcmp.eq.f32.partialorder %v661_v2, 8.507059e+37  ;;  %v2049_v45 = vld [vmem:[#allocation3 + $0xe0] sm:$0xf] }
 0x61a   :  { %v702_v8 = vor.u32 1.1754944e-38, %v701_v63  ;;  %vm700_vm4 = vcmp.eq.f32.partialorder %v699_v15, 8.507059e+37  ;;  %v2349_v63 = vld [vmem:[#allocation3 + $0xe8] sm:$0xf0]  ;;  %v2344_v15 = vld [vmem:[#allocation3 + $0xc4] sm:$0xf] }
 0x61d   :  { %v2450_v50 = vpop.eup %2449 }
 0x61e   :  { %v2452_v55 = vpop.eup %2451  ;;  %v653_v57 = vmul.f32 %v2450_v50, %v651_v53  ;;  %vm658_vm11 = vweird.f32 %v2450_v50  ;;  %v2351_v53 = vld [vmem:[#allocation3 + $0xf8] sm:$0xf0] }
 0x61f   :  { %v691_v58 = vmul.f32 %v2452_v55, %v689_v40  ;;  %vm696_vm12 = vweird.f32 %v2452_v55  ;;  %vm659_vm15 = vmor %vm657_vm13, %vm658_vm11  ;;  %v2061_v40 = vld [vmem:[#allocation3 + $0xf8] sm:$0xf] }
 0x620   :  { %v654_v60 = vsub.f32 1.0, %v653_v57  ;;  %vm697_vm1 = vmor %vm695_vm14, %vm696_vm12 }
 0x621   :  { %v692_v11 = vsub.f32 1.0, %v691_v58  ;;  %v643_v61 = vpop.f32.mrf.mxu3  ;;  %v2347_v58 = vld [vmem:[#allocation3 + $0xdc] sm:$0xf] }
 0x622   :  { %v655_v0 = vmul.f32 %v2450_v50, %v654_v60  ;;  %v2043_v60 = vld [vmem:[#allocation3 + $0xe4] sm:$0xf0]  ;;  %v2348_v61 = vld [vmem:[#allocation3 + $0xe0] sm:$0xf0] }
 0x623   :  { %v693_v3 = vmul.f32 %v2452_v55, %v692_v11  ;;  %v2041_v11 = vld [vmem:[#allocation3 + $0xd8] sm:$0xf] }
 0x624   :  { %v656_v4 = vadd.f32 %v2450_v50, %v655_v0  ;;  %v2046_v0 = vor.u32 %v2347_v58, %v2043_v60  ;;  %v2042_v2 = vor.u32 %v2348_v61, %v2041_v11 }
 0x625   :  { %v694_v1 = vadd.f32 %v2452_v55, %v693_v3  ;;  %v2050_v3 = vor.u32 %v2349_v63, %v2049_v45 }
 0x626   :  { %v660_v9 = vsel %vm659_vm15, %v2450_v50, %v656_v4  ;;  %v2352_v50 = vld [vmem:[#allocation3 + $0x100] sm:$0xf0]  ;;  %v2031_v4 = vld [vmem:[#allocation3 + $0xcc] sm:$0xf0] }
 0x627   :  { %v698_v12 = vsel %vm697_vm1, %v2452_v55, %v694_v1  ;;  %v2747_v13 = vsel %vm662_vm3, %v664_v7, %v660_v9  ;;  %v2062_v57 = vor.u32 %v2352_v50, %v2061_v40  ;;  %v2034_v1 = vor.u32 %v2344_v15, %v2031_v4 }
 0x628   :  { %v2749_v16 = vsel %vm700_vm4, %v702_v8, %v698_v12  ;;  %v667_v17 = vmul.f32 2.0, %v2747_v13  ;;  %v669_v25 = vmul.f32 %v2747_v13, %v2732_v39  ;;  %v2353_v39 = vld [vmem:[#allocation3 + $0x10c] sm:$0xf] }
 0x629   :  { %v705_v18 = vmul.f32 2.0, %v2749_v16  ;;  %v707_v29 = vmul.f32 %v2749_v16, %v2727_v34  ;;  %v2070_v36 = vor.u32 %v2353_v39, %v2067_v33  ;;  %v2053_v34 = vld [vmem:[#allocation3 + $0xf0] sm:$0xf]  ;;  %849 = vmatpush.bf16.msrb.mxu0 %v2062_v57 }
 0x62a   :  { %v2024_v19 = vadd.f32 -1.0, %v667_v17  ;;  %v2054_v55 = vor.u32 %v2351_v53, %v2053_v34  ;;  %v2029_v17 = vld [vmem:[#allocation3 + $0xc0] sm:$0xf] }
 0x62b   :  { %v2026_v20 = vadd.f32 -1.0, %v705_v18  ;;  %835 = vmatpush.bf16.msrb.mxu3 %v2070_v36  ;;  %v2345_v18 = vld [vmem:[#allocation3 + $0xc8] sm:$0xf0] }
 0x62c   :  { %671 = vrot.lane.b32.xlu0 %v2024_v19, %s2552_s2  ;;  %823 = vmatpush.bf16.msrb.mxu2 %v2054_v55  ;;  %v2037_v19 = vld [vmem:[#allocation3 + $0xc8] sm:$0xf] }
 0x62d   :  { %709 = vrot.lane.b32.xlu1 %v2026_v20, %s2552_s2  ;;  %850 = vmatpush.bf16.msrb.mxu0 %v2050_v3  ;;  %v2030_v20 = vor.u32 %v2345_v18, %v2029_v17 }
 0x62f   :  { %836 = vmatpush.bf16.msrb.mxu3 %v2058_v51 }
 0x630   :  { %824 = vmatpush.bf16.msrb.mxu2 %v2042_v2 }
 0x633   :  { %837 = vmatpush.bf16.msrb.mxu3 %v2046_v0 }
 0x634   :  { %825 = vmatpush.bf16.msrb.mxu2 %v2030_v20 }
 0x637   :  { %838 = vmatpush.bf16.msrb.mxu3 %v2034_v1 }
 0x69e   :  { %v672_v21 = vpop.permute.xlu0 %671 }
 0x69f   :  { %v710_v22 = vpop.permute.xlu1 %709  ;;  %v674_v23 = vmul.f32 %v672_v21, %v2747_v13  ;;  %v2346_v21 = vld [vmem:[#allocation3 + $0xd0] sm:$0xf0] }
 0x6a0   :  { %v712_v24 = vmul.f32 %v710_v22, %v2749_v16  ;;  %v2038_v22 = vor.u32 %v2346_v21, %v2037_v19 }
 0x6a1   :  { %676 = vrot.lane.b32.xlu2 %v674_v23, %s2553_s15 }
 0x6a2   :  { %714 = vrot.lane.b32.xlu0 %v712_v24, %s2553_s15  ;;  %851 = vmatpush.bf16.msrb.mxu0 %v2038_v22 }
 0x6fb   :  { %v677_v26 = vpop.permute.xlu2 %676 }
 0x6fc   :  { %v2761_v27 = vadd.f32 %v677_v26, %v669_v25  ;;  %v645_v26 = vadd.f32 %v2745_v54, %v2720_v62 }
 0x6fe   :  { %2453 = vtanh.f32 %v2761_v27 }
 0x704   :  { %v2454_v28 = vpop.eup %2453 }
 0x705   :  { %682 = vrot.lane.b32.xlu1 %v2454_v28, %s2552_s2 }
 0x714   :  { %v715_v30 = vpop.permute.xlu0 %714 }
 0x715   :  { %v2767_v31 = vadd.f32 %v715_v30, %v707_v29  ;;  %v169_v30 = vadd.f32 %v2680_v56, %v2667_v38 }
 0x717   :  { %2455 = vtanh.f32 %v2767_v31 }
 0x71d   :  { %v2456_v32 = vpop.eup %2455 }
 0x71e   :  { %720 = vrot.lane.b32.xlu2 %v2456_v32, %s2552_s2 }
 0x777   :  { %v683_v7 = vpop.permute.xlu1 %682 }
 0x778   :  { %v685_v8 = vmul.f32 %v683_v7, %v2747_v13  ;;  %v721_v9 = vpop.permute.xlu2 %720 }
 0x779   :  { %v723_v12 = vmul.f32 %v721_v9, %v2749_v16  ;;  %v2779_v16 = vpop.f32.mrf.mxu0 }
 0x77a   :  { %725 = vrot.lane.b32.xlu0 %v685_v8, %s2553_s15 }
 0x77b   :  { %729 = vrot.lane.b32.xlu1 %v723_v12, %s2552_s2 }
 0x7ec   :  { %v726_v23 = vpop.permute.xlu0 %725 }
 0x7ed   :  { %v730_v24 = vpop.permute.xlu1 %729 }
 0x7ee   :  { %v732_v25 = vsel %vm117_vm0, %v726_v23, %v730_v24 }
 0x7ef   :  { %v733_v13 = vpack.c.bf16 %v732_v25, %v732_v25 }
 0x7f1   :  { %2075 = vmatmul.msk.bf16.vlgmr.msrb.gmra.mxu2 %vm390_vm2, %v733_v13  ;;  %2076 = vmatmul.msk.bf16.vlgmr.msrb.gmra.mxu3 %vm390_vm2, %v733_v13 }
 0x7f2   :  { %2077 = vmatmul.msk.bf16.vlgmr.msrb.gmra.mxu0 %vm390_vm2, %v733_v13 }
 0x86f   :  { %v853_v28 = vpop.f32.mrf.mxu0 }
 0x870   :  { %v2783_v29 = vadd.f32 %v853_v28, %v645_v26  ;;  %v2120_v26 = vld [vmem:[#allocation3 + $0x168] sm:$0xf]  ;;  %v2108_v28 = vld [vmem:[#allocation3 + $0x150] sm:$0xf] }
 0x874   :  { %v827_v32 = vpop.f32.mrf.mxu2  ;;  %v840_v39 = vpop.f32.mrf.mxu3 }
 0x875   :  { %v858_v33 = vadd.f32 %v827_v32, %v169_v30  ;;  %v859_v35 = vadd.f32 %v840_v39, %v2687_v6  ;;  %v2096_v39 = vld [vmem:[#allocation3 + $0x138] sm:$0xf] }
 0x877   :  { %v2078_v36 = vmul.f32 -1.442695, %v858_v33  ;;  %v2080_v37 = vmul.f32 -1.442695, %v859_v35  ;;  %v855_v41 = vpop.f32.mrf.mxu0  ;;  %v2360_v33 = vld [vmem:[#allocation3 + $0x140] sm:$0xf0] }
 0x878   :  { %v2097_v35 = vor.u32 %v2360_v33, %v2096_v39 }
 0x879   :  { %2457 = vpow2.f32 %v2078_v36 }
 0x87a   :  { %2459 = vpow2.f32 %v2080_v37 }
 0x87c   :  { %v829_v42 = vpop.f32.mrf.mxu2  ;;  %v842_v46 = vpop.f32.mrf.mxu3 }
 0x87d   :  { %v2084_v46 = vld [vmem:[#allocation3 + $0x120] sm:$0xf] }
 0x87f   :  { %v2458_v44 = vpop.eup %2457 }
 0x880   :  { %v2460_v62 = vpop.eup %2459  ;;  %v863_v54 = vadd.f32 1.0, %v2458_v44  ;;  %v2357_v44 = vld [vmem:[#allocation3 + $0x128] sm:$0xf0] }
 0x881   :  { %v901_v48 = vadd.f32 1.0, %v2460_v62  ;;  %v2365_v62 = vld [vmem:[#allocation3 + $0x16c] sm:$0xf] }
 0x882   :  { %2461 = vrcp.f32 %v863_v54  ;;  %v875_v6 = vand.u32 2147483648, %v863_v54  ;;  %v873_v55 = vand.u32 2147483647, %v863_v54  ;;  %vm869_vm7 = vweird.f32 %v863_v54 }
 0x883   :  { %2463 = vrcp.f32 %v901_v48  ;;  %v913_v57 = vand.u32 2147483648, %v901_v48  ;;  %v911_v60 = vand.u32 2147483647, %v901_v48  ;;  %vm907_vm9 = vweird.f32 %v901_v48 }
 0x884   :  { %v876_v61 = vor.u32 1.1754944e-38, %v875_v6  ;;  %vm874_vm10 = vcmp.eq.f32.partialorder %v873_v55, 8.507059e+37  ;;  %v2116_v6 = vld [vmem:[#allocation3 + $0x158] sm:$0xf] }
 0x885   :  { %v914_v0 = vor.u32 1.1754944e-38, %v913_v57  ;;  %vm912_vm12 = vcmp.eq.f32.partialorder %v911_v60, 8.507059e+37  ;;  %v2098_v60 = vld [vmem:[#allocation3 + $0x144] sm:$0xf0] }
 0x888   :  { %v2462_v49 = vpop.eup %2461 }
 0x889   :  { %v2464_v56 = vpop.eup %2463  ;;  %v865_v34 = vmul.f32 %v2462_v49, %v863_v54  ;;  %vm870_vm5 = vweird.f32 %v2462_v49  ;;  %v2085_v54 = vor.u32 %v2357_v44, %v2084_v46 }
 0x88a   :  { %v903_v51 = vmul.f32 %v2464_v56, %v901_v48  ;;  %vm908_vm6 = vweird.f32 %v2464_v56  ;;  %vm871_vm8 = vmor %vm869_vm7, %vm870_vm5  ;;  %v2122_v48 = vld [vmem:[#allocation3 + $0x174] sm:$0xf0] }
 0x88b   :  { %v866_v53 = vsub.f32 1.0, %v865_v34  ;;  %vm909_vm11 = vmor %vm907_vm9, %vm908_vm6  ;;  %v2125_v34 = vor.u32 %v2365_v62, %v2122_v48 }
 0x88c   :  { %v904_v40 = vsub.f32 1.0, %v903_v51 }
 0x88d   :  { %v867_v50 = vmul.f32 %v2462_v49, %v866_v53  ;;  %v2362_v53 = vld [vmem:[#allocation3 + $0x154] sm:$0xf]  ;;  %1047 = vmatpush.bf16.msra.mxu2 %v2125_v34 }
 0x88e   :  { %v905_v58 = vmul.f32 %v2464_v56, %v904_v40  ;;  %v2110_v40 = vld [vmem:[#allocation3 + $0x15c] sm:$0xf0] }
 0x88f   :  { %v868_v11 = vadd.f32 %v2462_v49, %v867_v50  ;;  %v2364_v50 = vld [vmem:[#allocation3 + $0x160] sm:$0xf0]  ;;  %v2113_v55 = vor.u32 %v2362_v53, %v2110_v40 }
 0x890   :  { %v906_v45 = vadd.f32 %v2464_v56, %v905_v58  ;;  %v2117_v57 = vor.u32 %v2364_v50, %v2116_v6  ;;  %v2359_v58 = vld [vmem:[#allocation3 + $0x13c] sm:$0xf] }
 0x891   :  { %v872_v63 = vsel %vm871_vm8, %v2462_v49, %v868_v11  ;;  %v2128_v49 = vld [vmem:[#allocation3 + $0x170] sm:$0xf]  ;;  %v2104_v11 = vld [vmem:[#allocation3 + $0x140] sm:$0xf]  ;;  %1048 = vmatpush.bf16.msra.mxu2 %v2113_v55 }
 0x892   :  { %v877_v2 = vsel %vm874_vm10, %v876_v61, %v872_v63  ;;  %v910_v3 = vsel %vm909_vm11, %v2464_v56, %v906_v45  ;;  %v2367_v56 = vld [vmem:[#allocation3 + $0x178] sm:$0xf0]  ;;  %v2361_v61 = vld [vmem:[#allocation3 + $0x148] sm:$0xf0]  ;;  %v2101_v45 = vor.u32 %v2359_v58, %v2098_v60 }
 0x893   :  { %v879_v15 = vmul.f32 2.0, %v877_v2  ;;  %v915_v4 = vsel %vm912_vm12, %v914_v0, %v910_v3  ;;  %v881_v19 = vmul.f32 %v877_v2, %v2761_v27  ;;  %v2366_v27 = vld [vmem:[#allocation3 + $0x170] sm:$0xf0]  ;;  %v2129_v51 = vor.u32 %v2367_v56, %v2128_v49  ;;  %v2356_v0 = vld [vmem:[#allocation3 + $0x124] sm:$0xf] }
 0x894   :  { %v917_v1 = vmul.f32 2.0, %v915_v4  ;;  %v919_v21 = vmul.f32 %v915_v4, %v2767_v31  ;;  %v2121_v30 = vor.u32 %v2366_v27, %v2120_v26  ;;  %v2363_v31 = vld [vmem:[#allocation3 + $0x158] sm:$0xf0]  ;;  %v2105_v63 = vor.u32 %v2361_v61, %v2104_v11  ;;  %v2092_v3 = vld [vmem:[#allocation3 + $0x128] sm:$0xf] }
 0x895   :  { %v2079_v7 = vadd.f32 -1.0, %v879_v15  ;;  %v2109_v32 = vor.u32 %v2363_v31, %v2108_v28  ;;  %1060 = vmatpush.bf16.msra.mxu3 %v2129_v51  ;;  %1049 = vmatpush.bf16.msra.mxu2 %v2101_v45 }
 0x896   :  { %v2081_v8 = vadd.f32 -1.0, %v917_v1  ;;  %1034 = vmatpush.bf16.msrb.mxu1 %v2121_v30 }
 0x897   :  { %883 = vrot.lane.b32.xlu2 %v2079_v7, %s2552_s2 }
 0x898   :  { %921 = vrot.lane.b32.xlu0 %v2081_v8, %s2552_s2 }
 0x899   :  { %1061 = vmatpush.bf16.msra.mxu3 %v2117_v57 }
 0x89a   :  { %1035 = vmatpush.bf16.msrb.mxu1 %v2109_v32 }
 0x89d   :  { %1062 = vmatpush.bf16.msra.mxu3 %v2105_v63 }
 0x89e   :  { %1036 = vmatpush.bf16.msrb.mxu1 %v2097_v35 }
 0x8a2   :  { %1037 = vmatpush.bf16.msrb.mxu1 %v2085_v54 }
 0x8f1   :  { %v884_v9 = vpop.permute.xlu2 %883 }
 0x8f2   :  { %v886_v12 = vmul.f32 %v884_v9, %v877_v2 }
 0x8f4   :  { %888 = vrot.lane.b32.xlu1 %v886_v12, %s2553_s15 }
 0x90a   :  { %v922_v17 = vpop.permute.xlu0 %921 }
 0x90b   :  { %v924_v18 = vmul.f32 %v922_v17, %v915_v4 }
 0x90d   :  { %926 = vrot.lane.b32.xlu2 %v924_v18, %s2553_s15 }
 0x966   :  { %v889_v20 = vpop.permute.xlu1 %888 }
 0x967   :  { %v2794_v22 = vadd.f32 %v889_v20, %v881_v19  ;;  %v927_v23 = vpop.permute.xlu2 %926 }
 0x968   :  { %v2796_v24 = vadd.f32 %v927_v23, %v919_v21 }
 0x969   :  { %2465 = vtanh.f32 %v2794_v22 }
 0x96a   :  { %2467 = vtanh.f32 %v2796_v24 }
 0x96f   :  { %v2466_v25 = vpop.eup %2465 }
 0x970   :  { %v2468_v13 = vpop.eup %2467  ;;  %894 = vrot.lane.b32.xlu0 %v2466_v25, %s2552_s2 }
 0x971   :  { %932 = vrot.lane.b32.xlu1 %v2468_v13, %s2552_s2 }
 0x9e2   :  { %v895_v36 = vpop.permute.xlu0 %894 }
 0x9e3   :  { %v933_v37 = vpop.permute.xlu1 %932  ;;  %v897_v41 = vmul.f32 %v895_v36, %v877_v2  ;;  %v2086_v2 = vld [vmem:[#allocation3 + $0x12c] sm:$0xf0] }
 0x9e4   :  { %v935_v42 = vmul.f32 %v933_v37, %v915_v4  ;;  %v2089_v15 = vor.u32 %v2356_v0, %v2086_v2  ;;  %v2358_v4 = vld [vmem:[#allocation3 + $0x130] sm:$0xf0] }
 0x9e5   :  { %937 = vrot.lane.b32.xlu2 %v897_v41, %s2553_s15  ;;  %v2093_v1 = vor.u32 %v2358_v4, %v2092_v3 }
 0x9e6   :  { %941 = vrot.lane.b32.xlu0 %v935_v42, %s2552_s2  ;;  %1050 = vmatpush.bf16.msra.mxu2 %v2089_v15 }
 0x9e7   :  { %1063 = vmatpush.bf16.msra.mxu3 %v2093_v1 }
 0xa3f   :  { %v938_v7 = vpop.permute.xlu2 %937 }
 0xa58   :  { %v942_v8 = vpop.permute.xlu0 %941 }
 0xa59   :  { %v944_v9 = vsel %vm117_vm0, %v938_v7, %v942_v8 }
 0xa5a   :  { %v945_v12 = vpack.c.bf16 %v944_v9, %v944_v9 }
 0xa5c   :  { %2130 = vmatmul.msk.bf16.vlgmr.msrb.gmra.mxu1 %vm390_vm2, %v945_v12  ;;  %2131 = vmatmul.msk.bf16.vlgmr.msra.gmra.mxu2 %vm390_vm2, %v945_v12 }
 0xa5d   :  { %2132 = vmatmul.msk.bf16.vlgmr.msra.gmra.mxu3 %vm390_vm2, %v945_v12  ;;  %v2175_v12 = vld [vmem:[#allocation3 + $0x1c8] sm:$0xf] }
 0xad9   :  { %v1039_v17 = vpop.f32.mrf.mxu1 }
 0xada   :  { %v1070_v18 = vadd.f32 %v1039_v17, %v2685_v5  ;;  %v2378_v17 = vld [vmem:[#allocation3 + $0x1d0] sm:$0xf0] }
 0xadc   :  { %v2133_v19 = vmul.f32 -1.442695, %v1070_v18  ;;  %v2377_v18 = vld [vmem:[#allocation3 + $0x1cc] sm:$0xf] }
 0xade   :  { %2469 = vpow2.f32 %v2133_v19  ;;  %v2177_v19 = vld [vmem:[#allocation3 + $0x1d4] sm:$0xf0] }
 0xadf   :  { %v1052_v20 = vpop.f32.mrf.mxu2 }
 0xae0   :  { %v1071_v21 = vadd.f32 %v1052_v20, %v2682_v59  ;;  %v1065_v23 = vpop.f32.mrf.mxu3  ;;  %v2183_v20 = vld [vmem:[#allocation3 + $0x1d0] sm:$0xf] }
 0xae1   :  { %v2811_v25 = vadd.f32 %v1065_v23, %v2783_v29  ;;  %v1041_v13 = vpop.f32.mrf.mxu1  ;;  %v2180_v23 = vor.u32 %v2377_v18, %v2177_v19 }
 0xae2   :  { %v2135_v26 = vmul.f32 -1.442695, %v1071_v21  ;;  %v2379_v21 = vld [vmem:[#allocation3 + $0x1d8] sm:$0xf0] }
 0xae3   :  { %v2184_v13 = vor.u32 %v2379_v21, %v2183_v20  ;;  %1259 = vmatpush.bf16.msra.mxu1 %v2180_v23 }
 0xae4   :  { %v2470_v27 = vpop.eup %2469  ;;  %2471 = vpow2.f32 %v2135_v26  ;;  %v2163_v26 = vld [vmem:[#allocation3 + $0x1b0] sm:$0xf] }
 0xae5   :  { %v1075_v28 = vadd.f32 1.0, %v2470_v27  ;;  %v2375_v27 = vld [vmem:[#allocation3 + $0x1b8] sm:$0xf0]  ;;  %1272 = vmatpush.bf16.msrb.mxu2 %v2184_v13 }
 0xae7   :  { %2473 = vrcp.f32 %v1075_v28  ;;  %v1054_v30 = vpop.f32.mrf.mxu2  ;;  %v1087_v36 = vand.u32 2147483648, %v1075_v28  ;;  %v1085_v37 = vand.u32 2147483647, %v1075_v28  ;;  %vm1081_vm14 = vweird.f32 %v1075_v28 }
 0xae8   :  { %v1067_v31 = vpop.f32.mrf.mxu3  ;;  %v2164_v30 = vor.u32 %v2375_v27, %v2163_v26 }
 0xae9   :  { %v1088_v46 = vor.u32 1.1754944e-38, %v1087_v36  ;;  %vm1086_vm1 = vcmp.eq.f32.partialorder %v1085_v37, 8.507059e+37  ;;  %v2165_v31 = vld [vmem:[#allocation3 + $0x1bc] sm:$0xf0]  ;;  %v2372_v36 = vld [vmem:[#allocation3 + $0x1a0] sm:$0xf0] }
 0xaea   :  { %v2472_v32 = vpop.eup %2471  ;;  %v2153_v37 = vld [vmem:[#allocation3 + $0x1a4] sm:$0xf0] }
 0xaeb   :  { %v1113_v39 = vadd.f32 1.0, %v2472_v32  ;;  %v2171_v32 = vld [vmem:[#allocation3 + $0x1b8] sm:$0xf] }
 0xaed   :  { %v2474_v5 = vpop.eup %2473  ;;  %2475 = vrcp.f32 %v1113_v39  ;;  %v1125_v48 = vand.u32 2147483648, %v1113_v39  ;;  %v1123_v34 = vand.u32 2147483647, %v1113_v39  ;;  %vm1119_vm4 = vweird.f32 %v1113_v39 }
 0xaee   :  { %v1077_v33 = vmul.f32 %v2474_v5, %v1075_v28  ;;  %vm1082_vm13 = vweird.f32 %v2474_v5  ;;  %v2374_v28 = vld [vmem:[#allocation3 + $0x1b4] sm:$0xf] }
 0xaef   :  { %vm1083_vm15 = vmor %vm1081_vm14, %vm1082_vm13  ;;  %v1126_v40 = vor.u32 1.1754944e-38, %v1125_v48  ;;  %vm1124_vm6 = vcmp.eq.f32.partialorder %v1123_v34, 8.507059e+37  ;;  %v2368_v48 = vld [vmem:[#allocation3 + $0x184] sm:$0xf] }
 0xaf0   :  { %v1078_v35 = vsub.f32 1.0, %v1077_v33 }
 0xaf2   :  { %v1079_v59 = vmul.f32 %v2474_v5, %v1078_v35  ;;  %v2151_v35 = vld [vmem:[#allocation3 + $0x198] sm:$0xf] }
 0xaf3   :  { %v2476_v29 = vpop.eup %2475 }
 0xaf4   :  { %v1115_v41 = vmul.f32 %v2476_v29, %v1113_v39  ;;  %v1080_v42 = vadd.f32 %v2474_v5, %v1079_v59  ;;  %vm1120_vm3 = vweird.f32 %v2476_v29  ;;  %v2376_v39 = vld [vmem:[#allocation3 + $0x1c0] sm:$0xf0]  ;;  %v2371_v59 = vld [vmem:[#allocation3 + $0x19c] sm:$0xf] }
 0xaf5   :  { %vm1121_vm5 = vmor %vm1119_vm4, %vm1120_vm3  ;;  %v2172_v33 = vor.u32 %v2376_v39, %v2171_v32 }
 0xaf6   :  { %v1116_v44 = vsub.f32 1.0, %v1115_v41  ;;  %v1084_v62 = vsel %vm1083_vm15, %v2474_v5, %v1080_v42  ;;  %v2168_v5 = vor.u32 %v2374_v28, %v2165_v31  ;;  %v2373_v41 = vld [vmem:[#allocation3 + $0x1a8] sm:$0xf0]  ;;  %v2152_v42 = vor.u32 %v2372_v36, %v2151_v35 }
 0xaf7   :  { %v1089_v54 = vsel %vm1086_vm1, %v1088_v46, %v1084_v62  ;;  %1273 = vmatpush.bf16.msrb.mxu2 %v2172_v33  ;;  %v2156_v46 = vor.u32 %v2371_v59, %v2153_v37  ;;  %v2139_v62 = vld [vmem:[#allocation3 + $0x180] sm:$0xf] }
 0xaf8   :  { %v1091_v49 = vmul.f32 2.0, %v1089_v54  ;;  %v1117_v56 = vmul.f32 %v2476_v29, %v1116_v44  ;;  %v1093_v3 = vmul.f32 %v1089_v54, %v2794_v22  ;;  %v2176_v22 = vor.u32 %v2378_v17, %v2175_v12  ;;  %1260 = vmatpush.bf16.msra.mxu1 %v2168_v5 }
 0xafa   :  { %v2134_v51 = vadd.f32 -1.0, %v1091_v49  ;;  %v1118_v53 = vadd.f32 %v2476_v29, %v1117_v56  ;;  %1246 = vmatpush.bf16.msra.mxu0 %v2176_v22  ;;  %v2141_v49 = vld [vmem:[#allocation3 + $0x18c] sm:$0xf0] }
 0xafb   :  { %v2144_v34 = vor.u32 %v2368_v48, %v2141_v49 }
 0xafc   :  { %1095 = vrot.lane.b32.xlu1 %v2134_v51, %s2552_s2  ;;  %v1122_v6 = vsel %vm1121_vm5, %v2476_v29, %v1118_v53  ;;  %v2159_v29 = vld [vmem:[#allocation3 + $0x1a0] sm:$0xf]  ;;  %1261 = vmatpush.bf16.msra.mxu1 %v2156_v46  ;;  %v2147_v51 = vld [vmem:[#allocation3 + $0x188] sm:$0xf]  ;;  %v2370_v53 = vld [vmem:[#allocation3 + $0x190] sm:$0xf0] }
 0xafd   :  { %v1127_v50 = vsel %vm1124_vm6, %v1126_v40, %v1122_v6  ;;  %v2160_v44 = vor.u32 %v2373_v41, %v2159_v29  ;;  %v2148_v40 = vor.u32 %v2370_v53, %v2147_v51  ;;  %v2232_v53 = vld [vmem:[#allocation3 + $0x234] sm:$0xf0] }
 0xafe   :  { %v1129_v55 = vmul.f32 2.0, %v1127_v50  ;;  %v1131_v45 = vmul.f32 %v1127_v50, %v2796_v24  ;;  %1247 = vmatpush.bf16.msra.mxu0 %v2164_v30 }
 0xaff   :  { %1274 = vmatpush.bf16.msrb.mxu2 %v2160_v44 }
 0xb00   :  { %v2136_v57 = vadd.f32 -1.0, %v1129_v55  ;;  %1262 = vmatpush.bf16.msra.mxu1 %v2144_v34 }
 0xb02   :  { %1133 = vrot.lane.b32.xlu2 %v2136_v57, %s2552_s2  ;;  %1248 = vmatpush.bf16.msra.mxu0 %v2152_v42 }
 0xb03   :  { %1275 = vmatpush.bf16.msrb.mxu2 %v2148_v40  ;;  %v2230_v40 = vld [vmem:[#allocation3 + $0x228] sm:$0xf] }
 0xb5c   :  { %v1134_v58 = vpop.permute.xlu2 %1133 }
 0xb5d   :  { %v1136_v60 = vmul.f32 %v1134_v58, %v1127_v50 }
 0xb5f   :  { %1138 = vrot.lane.b32.xlu1 %v1136_v60, %s2553_s15 }
 0xb6e   :  { %v1096_v11 = vpop.permute.xlu1 %1095 }
 0xb6f   :  { %v1098_v61 = vmul.f32 %v1096_v11, %v1089_v54 }
 0xb71   :  { %1100 = vrot.lane.b32.xlu0 %v1098_v61, %s2553_s15 }
 0xbd1   :  { %v1139_v63 = vpop.permute.xlu1 %1138 }
 0xbd2   :  { %v2818_v0 = vadd.f32 %v1139_v63, %v1131_v45 }
 0xbd4   :  { %2477 = vtanh.f32 %v2818_v0 }
 0xbda   :  { %v2478_v2 = vpop.eup %2477 }
 0xbdb   :  { %1144 = vrot.lane.b32.xlu0 %v2478_v2, %s2552_s2 }
 0xbe3   :  { %v1101_v15 = vpop.permute.xlu0 %1100 }
 0xbe4   :  { %v2823_v4 = vadd.f32 %v1101_v15, %v1093_v3 }
 0xbe6   :  { %2479 = vtanh.f32 %v2823_v4 }
 0xbec   :  { %v2480_v1 = vpop.eup %2479 }
 0xbed   :  { %1106 = vrot.lane.b32.xlu2 %v2480_v1, %s2552_s2 }
 0xc47   :  { %v1107_v7 = vpop.permute.xlu2 %1106 }
 0xc48   :  { %v1109_v24 = vmul.f32 %v1107_v7, %v1089_v54  ;;  %v2369_v54 = vld [vmem:[#allocation3 + $0x188] sm:$0xf0] }
 0xc49   :  { %v2140_v56 = vor.u32 %v2369_v54, %v2139_v62 }
 0xc4a   :  { %1149 = vrot.lane.b32.xlu1 %v1109_v24, %s2553_s15 }
 0xc4b   :  { %1249 = vmatpush.bf16.msra.mxu0 %v2140_v56 }
 0xc4d   :  { %v1145_v8 = vpop.permute.xlu0 %1144 }
 0xc4e   :  { %v1147_v9 = vmul.f32 %v1145_v8, %v1127_v50 }
 0xc50   :  { %1153 = vrot.lane.b32.xlu2 %v1147_v9, %s2552_s2 }
 0xcaa   :  { %v1154_v6 = vpop.permute.xlu2 %1153 }
 0xcbc   :  { %v1150_v50 = vpop.permute.xlu1 %1149 }
 0xcbd   :  { %v1156_v55 = vsel %vm117_vm0, %v1150_v50, %v1154_v6  ;;  %v2390_v50 = vld [vmem:[#allocation3 + $0x230] sm:$0xf0] }
 0xcbe   :  { %v1157_v57 = vpack.c.bf16 %v1156_v55, %v1156_v55  ;;  %v2238_v55 = vld [vmem:[#allocation3 + $0x230] sm:$0xf] }
 0xcc0   :  { %2185 = vmatmul.msk.bf16.vlgmr.msra.gmra.mxu0 %vm390_vm2, %v1157_v57  ;;  %2186 = vmatmul.msk.bf16.vlgmr.msra.gmra.mxu1 %vm390_vm2, %v1157_v57 }
 0xcc1   :  { %2187 = vmatmul.msk.bf16.vlgmr.msrb.gmra.mxu2 %vm390_vm2, %v1157_v57  ;;  %v2391_v57 = vld [vmem:[#allocation3 + $0x238] sm:$0xf0] }
 0xd3d   :  { %v1251_v58 = vpop.f32.mrf.mxu0  ;;  %v1264_v60 = vpop.f32.mrf.mxu1 }
 0xd3e   :  { %v1282_v11 = vadd.f32 %v1251_v58, %v2691_v10  ;;  %v1283_v61 = vadd.f32 %v1264_v60, %v2678_v52  ;;  %v2231_v58 = vor.u32 %v2390_v50, %v2230_v40  ;;  %v2239_v60 = vor.u32 %v2391_v57, %v2238_v55 }
 0xd40   :  { %v2188_v45 = vmul.f32 -1.442695, %v1282_v11  ;;  %v2190_v63 = vmul.f32 -1.442695, %v1283_v61  ;;  %v2386_v11 = vld [vmem:[#allocation3 + $0x214] sm:$0xf]  ;;  %1458 = vmatpush.bf16.msrb.mxu3 %v2231_v58  ;;  %1484 = vmatpush.bf16.msrb.mxu1 %v2239_v60 }
 0xd41   :  { %v2220_v61 = vld [vmem:[#allocation3 + $0x21c] sm:$0xf0] }
 0xd42   :  { %2481 = vpow2.f32 %v2188_v45  ;;  %v2223_v45 = vor.u32 %v2386_v11, %v2220_v61 }
 0xd43   :  { %2483 = vpow2.f32 %v2190_v63  ;;  %v2387_v63 = vld [vmem:[#allocation3 + $0x218] sm:$0xf0] }
 0xd44   :  { %v1277_v2 = vpop.f32.mrf.mxu2 }
 0xd45   :  { %v2836_v3 = vadd.f32 %v1277_v2, %v2811_v25  ;;  %v1253_v15 = vpop.f32.mrf.mxu0  ;;  %v1266_v1 = vpop.f32.mrf.mxu1  ;;  %v2226_v2 = vld [vmem:[#allocation3 + $0x218] sm:$0xf] }
 0xd46   :  { %v2388_v15 = vld [vmem:[#allocation3 + $0x220] sm:$0xf0] }
 0xd48   :  { %v2482_v7 = vpop.eup %2481 }
 0xd49   :  { %v2484_v24 = vpop.eup %2483  ;;  %v1287_v8 = vadd.f32 1.0, %v2482_v7  ;;  %v2227_v7 = vor.u32 %v2388_v15, %v2226_v2 }
 0xd4a   :  { %v1325_v9 = vadd.f32 1.0, %v2484_v24  ;;  %v2383_v24 = vld [vmem:[#allocation3 + $0x1fc] sm:$0xf] }
 0xd4b   :  { %2485 = vrcp.f32 %v1287_v8  ;;  %v1299_v20 = vand.u32 2147483648, %v1287_v8  ;;  %v1297_v25 = vand.u32 2147483647, %v1287_v8  ;;  %vm1293_vm9 = vweird.f32 %v1287_v8  ;;  %1485 = vmatpush.bf16.msrb.mxu1 %v2227_v7 }
 0xd4c   :  { %2487 = vrcp.f32 %v1325_v9  ;;  %v1279_v12 = vpop.f32.mrf.mxu2  ;;  %v1337_v21 = vand.u32 2147483648, %v1325_v9  ;;  %v1335_v26 = vand.u32 2147483647, %v1325_v9  ;;  %vm1331_vm10 = vweird.f32 %v1325_v9 }
 0xd4d   :  { %v1300_v30 = vor.u32 1.1754944e-38, %v1299_v20  ;;  %vm1298_vm13 = vcmp.eq.f32.partialorder %v1297_v25, 8.507059e+37  ;;  %v2384_v12 = vld [vmem:[#allocation3 + $0x200] sm:$0xf0]  ;;  %v2196_v20 = vld [vmem:[#allocation3 + $0x1ec] sm:$0xf0] }
 0xd4e   :  { %v1338_v31 = vor.u32 1.1754944e-38, %v1337_v21  ;;  %vm1336_vm14 = vcmp.eq.f32.partialorder %v1335_v26, 8.507059e+37 }
 0xd51   :  { %v2486_v10 = vpop.eup %2485 }
 0xd52   :  { %v2488_v17 = vpop.eup %2487  ;;  %v1289_v52 = vmul.f32 %v2486_v10, %v1287_v8  ;;  %vm1294_vm7 = vweird.f32 %v2486_v10  ;;  %v2208_v8 = vld [vmem:[#allocation3 + $0x204] sm:$0xf0] }
 0xd53   :  { %v1327_v18 = vmul.f32 %v2488_v17, %v1325_v9  ;;  %vm1332_vm8 = vweird.f32 %v2488_v17  ;;  %vm1295_vm11 = vmor %vm1293_vm9, %vm1294_vm7  ;;  %v2206_v9 = vld [vmem:[#allocation3 + $0x1f8] sm:$0xf] }
 0xd54   :  { %v1290_v22 = vsub.f32 1.0, %v1289_v52  ;;  %vm1333_vm12 = vmor %vm1331_vm10, %vm1332_vm8  ;;  %v2211_v52 = vor.u32 %v2383_v24, %v2208_v8 }
 0xd55   :  { %v1328_v19 = vsub.f32 1.0, %v1327_v18  ;;  %v2207_v18 = vor.u32 %v2384_v12, %v2206_v9 }
 0xd56   :  { %v1291_v23 = vmul.f32 %v2486_v10, %v1290_v22 }
 0xd57   :  { %v1329_v13 = vmul.f32 %v2488_v17, %v1328_v19  ;;  %v2380_v19 = vld [vmem:[#allocation3 + $0x1e4] sm:$0xf] }
 0xd58   :  { %v1292_v27 = vadd.f32 %v2486_v10, %v1291_v23  ;;  %v2199_v21 = vor.u32 %v2380_v19, %v2196_v20 }
 0xd59   :  { %v1330_v28 = vadd.f32 %v2488_v17, %v1329_v13 }
 0xd5a   :  { %v1296_v32 = vsel %vm1295_vm11, %v2486_v10, %v1292_v27  ;;  %v2214_v10 = vld [vmem:[#allocation3 + $0x200] sm:$0xf] }
 0xd5b   :  { %v1334_v39 = vsel %vm1333_vm12, %v2488_v17, %v1330_v28  ;;  %v2838_v5 = vsel %vm1298_vm13, %v1300_v30, %v1296_v32  ;;  %v2385_v17 = vld [vmem:[#allocation3 + $0x208] sm:$0xf0]  ;;  %v2194_v27 = vld [vmem:[#allocation3 + $0x1e0] sm:$0xf]  ;;  %v2202_v30 = vld [vmem:[#allocation3 + $0x1e8] sm:$0xf] }
 0xd5c   :  { %v2840_v33 = vsel %vm1336_vm14, %v1338_v31, %v1334_v39  ;;  %v1303_v35 = vmul.f32 2.0, %v2838_v5  ;;  %v1305_v44 = vmul.f32 %v2838_v5, %v2823_v4  ;;  %v2389_v4 = vld [vmem:[#allocation3 + $0x22c] sm:$0xf]  ;;  %v2215_v22 = vor.u32 %v2385_v17, %v2214_v10  ;;  %v2382_v32 = vld [vmem:[#allocation3 + $0x1f0] sm:$0xf0] }
 0xd5d   :  { %v1341_v36 = vmul.f32 2.0, %v2840_v33  ;;  %v1343_v49 = vmul.f32 %v2840_v33, %v2818_v0  ;;  %v2235_v6 = vor.u32 %v2389_v4, %v2232_v53  ;;  %v2218_v0 = vld [vmem:[#allocation3 + $0x210] sm:$0xf]  ;;  %v2381_v28 = vld [vmem:[#allocation3 + $0x1e8] sm:$0xf0]  ;;  %v2203_v39 = vor.u32 %v2382_v32, %v2202_v30 }
 0xd5e   :  { %v2189_v59 = vadd.f32 -1.0, %v1303_v35  ;;  %v2219_v1 = vor.u32 %v2387_v63, %v2218_v0  ;;  %1486 = vmatpush.bf16.msrb.mxu1 %v2215_v22  ;;  %v2195_v31 = vor.u32 %v2381_v28, %v2194_v27 }
 0xd5f   :  { %v2191_v37 = vadd.f32 -1.0, %v1341_v36  ;;  %1471 = vmatpush.bf16.msrb.mxu0 %v2235_v6 }
 0xd60   :  { %1307 = vrot.lane.b32.xlu0 %v2189_v59, %s2552_s2  ;;  %1459 = vmatpush.bf16.msrb.mxu3 %v2219_v1 }
 0xd61   :  { %1345 = vrot.lane.b32.xlu1 %v2191_v37, %s2552_s2 }
 0xd62   :  { %1487 = vmatpush.bf16.msrb.mxu1 %v2203_v39  ;;  %v2402_v39 = vld [vmem:[#allocation3 + $0x290] sm:$0xf0] }
 0xd63   :  { %1472 = vmatpush.bf16.msrb.mxu0 %v2223_v45 }
 0xd64   :  { %1460 = vmatpush.bf16.msrb.mxu3 %v2207_v18 }
 0xd67   :  { %1473 = vmatpush.bf16.msrb.mxu0 %v2211_v52 }
 0xd68   :  { %1461 = vmatpush.bf16.msrb.mxu3 %v2195_v31 }
 0xd6b   :  { %1474 = vmatpush.bf16.msrb.mxu0 %v2199_v21 }
 0xdd2   :  { %v1308_v29 = vpop.permute.xlu0 %1307 }
 0xdd3   :  { %v1346_v41 = vpop.permute.xlu1 %1345  ;;  %v1310_v42 = vmul.f32 %v1308_v29, %v2838_v5 }
 0xdd4   :  { %v1348_v46 = vmul.f32 %v1346_v41, %v2840_v33 }
 0xdd5   :  { %1312 = vrot.lane.b32.xlu2 %v1310_v42, %s2553_s15 }
 0xdd6   :  { %1350 = vrot.lane.b32.xlu0 %v1348_v46, %s2553_s15 }
 0xe2f   :  { %v1313_v62 = vpop.permute.xlu2 %1312 }
 0xe30   :  { %v2852_v54 = vadd.f32 %v1313_v62, %v1305_v44 }
 0xe32   :  { %2489 = vtanh.f32 %v2852_v54 }
 0xe38   :  { %v2490_v48 = vpop.eup %2489 }
 0xe39   :  { %1318 = vrot.lane.b32.xlu1 %v2490_v48, %s2552_s2 }
 0xe48   :  { %v1351_v56 = vpop.permute.xlu0 %1350 }
 0xe49   :  { %v2858_v34 = vadd.f32 %v1351_v56, %v1343_v49 }
 0xe4b   :  { %2491 = vtanh.f32 %v2858_v34 }
 0xe51   :  { %v2492_v51 = vpop.eup %2491 }
 0xe52   :  { %1356 = vrot.lane.b32.xlu2 %v2492_v51, %s2552_s2 }
 0xeab   :  { %v1319_v23 = vpop.permute.xlu1 %1318 }
 0xeac   :  { %v1321_v25 = vmul.f32 %v1319_v23, %v2838_v5  ;;  %v1357_v13 = vpop.permute.xlu2 %1356 }
 0xead   :  { %v1359_v26 = vmul.f32 %v1357_v13, %v2840_v33 }
 0xeae   :  { %1361 = vrot.lane.b32.xlu0 %v1321_v25, %s2553_s15 }
 0xeaf   :  { %1365 = vrot.lane.b32.xlu1 %v1359_v26, %s2552_s2 }
 0xf20   :  { %v1362_v35 = vpop.permute.xlu0 %1361 }
 0xf21   :  { %v1366_v36 = vpop.permute.xlu1 %1365 }
 0xf22   :  { %v1368_v59 = vsel %vm117_vm0, %v1362_v35, %v1366_v36  ;;  %v2401_v35 = vld [vmem:[#allocation3 + $0x28c] sm:$0xf] }
 0xf23   :  { %v1369_v5 = vpack.c.bf16 %v1368_v59, %v1368_v59  ;;  %v2287_v59 = vld [vmem:[#allocation3 + $0x294] sm:$0xf0] }
 0xf25   :  { %2240 = vmatmul.msk.bf16.vlgmr.msrb.gmra.mxu3 %vm390_vm2, %v1369_v5  ;;  %2241 = vmatmul.msk.bf16.vlgmr.msrb.gmra.mxu0 %vm390_vm2, %v1369_v5 }
 0xf26   :  { %2242 = vmatmul.msk.bf16.vlgmr.msrb.gmra.mxu1 %vm390_vm2, %v1369_v5  ;;  %v2293_v5 = vld [vmem:[#allocation3 + $0x290] sm:$0xf] }
 0xfa2   :  { %v1476_v33 = vpop.f32.mrf.mxu0 }
 0xfa3   :  { %v1495_v37 = vadd.f32 %v1476_v33, %v2674_v47  ;;  %v1489_v29 = vpop.f32.mrf.mxu1  ;;  %v2403_v33 = vld [vmem:[#allocation3 + $0x298] sm:$0xf0] }
 0xfa4   :  { %v2872_v41 = vadd.f32 %v1489_v29, %v2836_v3  ;;  %v2294_v29 = vor.u32 %v2403_v33, %v2293_v5 }
 0xfa5   :  { %v2245_v42 = vmul.f32 -1.442695, %v1495_v37  ;;  %v2290_v37 = vor.u32 %v2401_v35, %v2287_v59 }
 0xfa6   :  { %1696 = vmatpush.bf16.msra.mxu0 %v2294_v29 }
 0xfa7   :  { %2493 = vpow2.f32 %v2245_v42  ;;  %v2273_v42 = vld [vmem:[#allocation3 + $0x270] sm:$0xf]  ;;  %1683 = vmatpush.bf16.msra.mxu3 %v2290_v37 }
 0xfa8   :  { %v1463_v46 = vpop.f32.mrf.mxu3 }
 0xfa9   :  { %v1494_v44 = vadd.f32 %v1463_v46, %v2696_v14  ;;  %v2399_v46 = vld [vmem:[#allocation3 + $0x278] sm:$0xf0] }
 0xfaa   :  { %v1478_v62 = vpop.f32.mrf.mxu0 }
 0xfab   :  { %v2243_v48 = vmul.f32 -1.442695, %v1494_v44  ;;  %v1491_v49 = vpop.f32.mrf.mxu1  ;;  %v2398_v44 = vld [vmem:[#allocation3 + $0x274] sm:$0xf]  ;;  %v2274_v62 = vor.u32 %v2399_v46, %v2273_v42 }
 0xfac   :  { %v2281_v49 = vld [vmem:[#allocation3 + $0x278] sm:$0xf] }
 0xfad   :  { %v2494_v56 = vpop.eup %2493  ;;  %2495 = vpow2.f32 %v2243_v48  ;;  %v2275_v48 = vld [vmem:[#allocation3 + $0x27c] sm:$0xf0] }
 0xfae   :  { %v1537_v51 = vadd.f32 1.0, %v2494_v56  ;;  %v2400_v56 = vld [vmem:[#allocation3 + $0x280] sm:$0xf0] }
 0xfb0   :  { %2497 = vrcp.f32 %v1537_v51  ;;  %v1465_v4 = vpop.f32.mrf.mxu3  ;;  %v1549_v50 = vand.u32 2147483648, %v1537_v51  ;;  %v1547_v57 = vand.u32 2147483647, %v1537_v51  ;;  %vm1543_vm1 = vweird.f32 %v1537_v51 }
 0xfb1   :  { %v2282_v4 = vor.u32 %v2400_v56, %v2281_v49 }
 0xfb2   :  { %v1550_v11 = vor.u32 1.1754944e-38, %v1549_v50  ;;  %vm1548_vm4 = vcmp.eq.f32.partialorder %v1547_v57, 8.507059e+37  ;;  %v2397_v50 = vld [vmem:[#allocation3 + $0x268] sm:$0xf0] }
 0xfb3   :  { %v2496_v53 = vpop.eup %2495  ;;  %1697 = vmatpush.bf16.msra.mxu0 %v2282_v4 }
 0xfb4   :  { %v1499_v40 = vadd.f32 1.0, %v2496_v53  ;;  %v2261_v53 = vld [vmem:[#allocation3 + $0x258] sm:$0xf] }
 0xfb6   :  { %v2498_v47 = vpop.eup %2497  ;;  %2499 = vrcp.f32 %v1499_v40  ;;  %v1511_v63 = vand.u32 2147483648, %v1499_v40  ;;  %v1509_v1 = vand.u32 2147483647, %v1499_v40  ;;  %vm1505_vm6 = vweird.f32 %v1499_v40 }
 0xfb7   :  { %v1539_v6 = vmul.f32 %v2498_v47, %v1537_v51  ;;  %vm1544_vm15 = vweird.f32 %v2498_v47  ;;  %v2278_v51 = vor.u32 %v2398_v44, %v2275_v48 }
 0xfb8   :  { %vm1545_vm3 = vmor %vm1543_vm1, %vm1544_vm15  ;;  %v1512_v8 = vor.u32 1.1754944e-38, %v1511_v63  ;;  %vm1510_vm8 = vcmp.eq.f32.partialorder %v1509_v1, 8.507059e+37 }
 0xfb9   :  { %v1540_v3 = vsub.f32 1.0, %v1539_v6  ;;  %v2263_v6 = vld [vmem:[#allocation3 + $0x264] sm:$0xf0]  ;;  %1684 = vmatpush.bf16.msra.mxu3 %v2278_v51 }
 0xfbb   :  { %v1541_v55 = vmul.f32 %v2498_v47, %v1540_v3  ;;  %v2269_v3 = vld [vmem:[#allocation3 + $0x260] sm:$0xf] }
 0xfbc   :  { %v2500_v58 = vpop.eup %2499 }
 0xfbd   :  { %v1501_v14 = vmul.f32 %v2500_v58, %v1499_v40  ;;  %v1542_v60 = vadd.f32 %v2498_v47, %v1541_v55  ;;  %vm1506_vm5 = vweird.f32 %v2500_v58  ;;  %v2396_v40 = vld [vmem:[#allocation3 + $0x260] sm:$0xf0] }
 0xfbe   :  { %vm1507_vm7 = vmor %vm1505_vm6, %vm1506_vm5  ;;  %v2262_v55 = vor.u32 %v2396_v40, %v2261_v53 }
 0xfbf   :  { %v1502_v61 = vsub.f32 1.0, %v1501_v14  ;;  %v1546_v0 = vsel %vm1545_vm3, %v2498_v47, %v1542_v60  ;;  %v2395_v47 = vld [vmem:[#allocation3 + $0x25c] sm:$0xf]  ;;  %v2249_v14 = vld [vmem:[#allocation3 + $0x240] sm:$0xf] }
 0xfc0   :  { %v1551_v45 = vsel %vm1548_vm4, %v1550_v11, %v1546_v0  ;;  %v2266_v57 = vor.u32 %v2395_v47, %v2263_v6  ;;  %v2393_v60 = vld [vmem:[#allocation3 + $0x248] sm:$0xf0]  ;;  %v2251_v0 = vld [vmem:[#allocation3 + $0x24c] sm:$0xf0]  ;;  %vm1882_vm4 = vcmask 7168  }
 0xfc1   :  { %v1553_v2 = vmul.f32 2.0, %v1551_v45  ;;  %v1503_v15 = vmul.f32 %v2500_v58, %v1502_v61  ;;  %v1555_v20 = vmul.f32 %v1551_v45, %v2858_v34  ;;  %v2250_v11 = vor.u32 %v2393_v60, %v2249_v14  ;;  %v2392_v61 = vld [vmem:[#allocation3 + $0x244] sm:$0xf] }
 0xfc2   :  { %1685 = vmatpush.bf16.msra.mxu3 %v2266_v57  ;;  %v2254_v63 = vor.u32 %v2392_v61, %v2251_v0 }
 0xfc3   :  { %v2246_v7 = vadd.f32 -1.0, %v1553_v2  ;;  %v1504_v24 = vadd.f32 %v2500_v58, %v1503_v15  ;;  %v2394_v2 = vld [vmem:[#allocation3 + $0x250] sm:$0xf0] }
 0xfc5   :  { %1557 = vrot.lane.b32.xlu0 %v2246_v7, %s2552_s2  ;;  %v1508_v9 = vsel %vm1507_vm7, %v2500_v58, %v1504_v24  ;;  %v2270_v58 = vor.u32 %v2397_v50, %v2269_v3 }
 0xfc6   :  { %v1513_v12 = vsel %vm1510_vm8, %v1512_v8, %v1508_v9  ;;  %1686 = vmatpush.bf16.msra.mxu3 %v2254_v63 }
 0xfc7   :  { %v1515_v10 = vmul.f32 2.0, %v1513_v12  ;;  %v1517_v25 = vmul.f32 %v1513_v12, %v2852_v54  ;;  %v2285_v54 = vld [vmem:[#allocation3 + $0x288] sm:$0xf]  ;;  %1698 = vmatpush.bf16.msra.mxu0 %v2270_v58 }
 0xfc8   :  { %v2286_v36 = vor.u32 %v2402_v39, %v2285_v54 }
 0xfc9   :  { %v2244_v17 = vadd.f32 -1.0, %v1515_v10  ;;  %v181_v10 = vadd.f32 %v2779_v16, %v2667_v38 }
 0xfca   :  { %1670 = vmatpush.bf16.msra.mxu2 %v2286_v36 }
 0xfcb   :  { %1519 = vrot.lane.b32.xlu2 %v2244_v17, %s2552_s2 }
 0xfce   :  { %1671 = vmatpush.bf16.msra.mxu2 %v2274_v62 }
 0xfd2   :  { %1672 = vmatpush.bf16.msra.mxu2 %v2262_v55 }
 0xfd6   :  { %1673 = vmatpush.bf16.msra.mxu2 %v2250_v11 }
0x1025   :  { %v1520_v52 = vpop.permute.xlu2 %1519 }
0x1026   :  { %v1522_v18 = vmul.f32 %v1520_v52, %v1513_v12 }
0x1028   :  { %1524 = vrot.lane.b32.xlu1 %v1522_v18, %s2553_s15 }
0x1037   :  { %v1558_v22 = vpop.permute.xlu0 %1557 }
0x1038   :  { %v1560_v19 = vmul.f32 %v1558_v22, %v1551_v45 }
0x103a   :  { %1562 = vrot.lane.b32.xlu2 %v1560_v19, %s2553_s15 }
0x1094   :  { %v1563_v21 = vpop.permute.xlu2 %1562 }
0x1095   :  { %v2880_v23 = vadd.f32 %v1563_v21, %v1555_v20 }
0x1097   :  { %2501 = vtanh.f32 %v2880_v23 }
0x109a   :  { %v1525_v13 = vpop.permute.xlu1 %1524 }
0x109b   :  { %v2884_v26 = vadd.f32 %v1525_v13, %v1517_v25 }
0x109d   :  { %v2502_v27 = vpop.eup %2501  ;;  %2503 = vtanh.f32 %v2884_v26 }
0x109e   :  { %1568 = vrot.lane.b32.xlu1 %v2502_v27, %s2552_s2 }
0x10a3   :  { %v2504_v28 = vpop.eup %2503 }
0x10a4   :  { %1530 = vrot.lane.b32.xlu0 %v2504_v28, %s2552_s2 }
0x1110   :  { %v1569_v30 = vpop.permute.xlu1 %1568 }
0x1111   :  { %v1571_v34 = vmul.f32 %v1569_v30, %v1551_v45  ;;  %v2257_v45 = vld [vmem:[#allocation3 + $0x248] sm:$0xf] }
0x1112   :  { %v2258_v15 = vor.u32 %v2394_v2, %v2257_v45  ;;  %v2407_v2 = vld [vmem:[#allocation3 + $0x2f8] sm:$0xf0] }
0x1113   :  { %1577 = vrot.lane.b32.xlu0 %v1571_v34, %s2552_s2 }
0x1114   :  { %1699 = vmatpush.bf16.msra.mxu0 %v2258_v15  ;;  %v2312_v15 = vld [vmem:[#allocation3 + $0x2d8] sm:$0xf] }
0x1116   :  { %v1531_v31 = vpop.permute.xlu0 %1530 }
0x1117   :  { %v1533_v32 = vmul.f32 %v1531_v31, %v1513_v12 }
0x1119   :  { %1573 = vrot.lane.b32.xlu2 %v1533_v32, %s2553_s15 }
0x1173   :  { %v1574_v1 = vpop.permute.xlu2 %1573 }
0x1185   :  { %v1578_v7 = vpop.permute.xlu0 %1577 }
0x1186   :  { %v1580_v24 = vsel %vm117_vm0, %v1574_v1, %v1578_v7  ;;  %v2406_v7 = vld [vmem:[#allocation3 + $0x2e0] sm:$0xf0] }
0x1187   :  { %v1581_v8 = vpack.c.bf16 %v1580_v24, %v1580_v24  ;;  %v2308_v24 = vld [vmem:[#allocation3 + $0x2c0] sm:$0xf] }
0x1189   :  { %2295 = vmatmul.msk.bf16.vlgmr.msra.gmra.mxu2 %vm390_vm2, %v1581_v8  ;;  %2296 = vmatmul.msk.bf16.vlgmr.msra.gmra.mxu3 %vm390_vm2, %v1581_v8 }
0x118a   :  { %2297 = vmatmul.msk.bf16.vlgmr.msra.gmra.mxu0 %vm390_vm2, %v1581_v8  ;;  %v2405_v8 = vld [vmem:[#allocation3 + $0x2c8] sm:$0xf0] }
0x1207   :  { %v1701_v9 = vpop.f32.mrf.mxu0 }
0x1208   :  { %v2896_v12 = vadd.f32 %v1701_v9, %v2872_v41  ;;  %v2309_v9 = vor.u32 %v2405_v8, %v2308_v24 }
0x120c   :  { %v1675_v17 = vpop.f32.mrf.mxu2  ;;  %v1688_v52 = vpop.f32.mrf.mxu3 }
0x120d   :  { %v1706_v18 = vadd.f32 %v1675_v17, %v181_v10  ;;  %v1707_v22 = vadd.f32 %v1688_v52, %v2670_v43  ;;  %v2304_v10 = vld [vmem:[#allocation3 + $0x2a8] sm:$0xf]  ;;  %v2404_v17 = vld [vmem:[#allocation3 + $0x2b0] sm:$0xf0] }
0x120e   :  { %v2305_v52 = vor.u32 %v2404_v17, %v2304_v10 }
0x120f   :  { %v2298_v19 = vmul.f32 -1.442695, %v1706_v18  ;;  %v2300_v20 = vmul.f32 -1.442695, %v1707_v22  ;;  %v1703_v21 = vpop.f32.mrf.mxu0 }
0x1210   :  { %v2418_v21 = vld [vmem:[%s2928_s4] ss:$0 sm:$0xff] }
0x1211   :  { %2505 = vpow2.f32 %v2298_v19 }
0x1212   :  { %2507 = vpow2.f32 %v2300_v20 }
0x1214   :  { %v1677_v25 = vpop.f32.mrf.mxu2  ;;  %v1690_v13 = vpop.f32.mrf.mxu3 }
0x1217   :  { %v2506_v27 = vpop.eup %2505 }
0x1218   :  { %v2508_v28 = vpop.eup %2507  ;;  %v1711_v30 = vadd.f32 1.0, %v2506_v27 }
0x1219   :  { %v1749_v41 = vadd.f32 1.0, %v2508_v28  ;;  %v2419_v28 = vld [vmem:[%s2929_s5] ss:$0 sm:$0xff] }
0x121a   :  { %2509 = vrcp.f32 %v1711_v30  ;;  %v1723_v43 = vand.u32 2147483648, %v1711_v30  ;;  %v1721_v36 = vand.u32 2147483647, %v1711_v30  ;;  %vm1717_vm11 = vweird.f32 %v1711_v30 }
0x121b   :  { %2511 = vrcp.f32 %v1749_v41  ;;  %v1761_v39 = vand.u32 2147483648, %v1749_v41  ;;  %v1759_v5 = vand.u32 2147483647, %v1749_v41  ;;  %vm1755_vm12 = vweird.f32 %v1749_v41 }
0x121c   :  { %v1724_v29 = vor.u32 1.1754944e-38, %v1723_v43  ;;  %vm1722_vm15 = vcmp.eq.f32.partialorder %v1721_v36, 8.507059e+37 }
0x121d   :  { %v1762_v42 = vor.u32 1.1754944e-38, %v1761_v39  ;;  %vm1760_vm1 = vcmp.eq.f32.partialorder %v1759_v5, 8.507059e+37 }
0x1220   :  { %v2510_v34 = vpop.eup %2509 }
0x1221   :  { %v2512_v38 = vpop.eup %2511  ;;  %v1713_v16 = vmul.f32 %v2510_v34, %v1711_v30  ;;  %vm1718_vm9 = vweird.f32 %v2510_v34 }
0x1222   :  { %v1751_v31 = vmul.f32 %v2512_v38, %v1749_v41  ;;  %vm1756_vm10 = vweird.f32 %v2512_v38  ;;  %vm1719_vm13 = vmor %vm1717_vm11, %vm1718_vm9 }
0x1223   :  { %v1714_v32 = vsub.f32 1.0, %v1713_v16  ;;  %vm1757_vm14 = vmor %vm1755_vm12, %vm1756_vm10  ;;  %v2420_v16 = vld [vmem:[#allocation2] ss:$0 sm:$0xff] }
0x1224   :  { %v1752_v54 = vsub.f32 1.0, %v1751_v31 }
0x1225   :  { %v1715_v35 = vmul.f32 %v2510_v34, %v1714_v32 }
0x1226   :  { %v1753_v59 = vmul.f32 %v2512_v38, %v1752_v54 }
0x1227   :  { %v1716_v33 = vadd.f32 %v2510_v34, %v1715_v35 }
0x1228   :  { %v1754_v37 = vadd.f32 %v2512_v38, %v1753_v59 }
0x1229   :  { %v1720_v46 = vsel %vm1719_vm13, %v2510_v34, %v1716_v33 }
0x122a   :  { %v1758_v44 = vsel %vm1757_vm14, %v2512_v38, %v1754_v37  ;;  %v1725_v62 = vsel %vm1722_vm15, %v1724_v29, %v1720_v46 }
0x122b   :  { %v1763_v48 = vsel %vm1760_vm1, %v1762_v42, %v1758_v44  ;;  %v1727_v49 = vmul.f32 2.0, %v1725_v62  ;;  %v1729_v58 = vmul.f32 %v1725_v62, %v2884_v26  ;;  %v2313_v26 = vor.u32 %v2406_v7, %v2312_v15 }
0x122c   :  { %v1765_v56 = vmul.f32 2.0, %v1763_v48  ;;  %v1767_v3 = vmul.f32 %v1763_v48, %v2880_v23  ;;  %v2316_v23 = vld [vmem:[#allocation3 + $0x2f0] sm:$0xf] }
0x122d   :  { %v2299_v51 = vadd.f32 -1.0, %v1727_v49  ;;  %v2317_v1 = vor.u32 %v2407_v2, %v2316_v23 }
0x122e   :  { %v2301_v4 = vadd.f32 -1.0, %v1765_v56 }
0x122f   :  { %1731 = vrot.lane.b32.xlu1 %v2299_v51, %s2552_s2  ;;  %1834 = vmatpush.bf16.msra.mxu1 %v2317_v1 }
0x1230   :  { %1769 = vrot.lane.b32.xlu2 %v2301_v4, %s2552_s2 }
0x1233   :  { %1835 = vmatpush.bf16.msra.mxu1 %v2313_v26 }
0x1237   :  { %1836 = vmatpush.bf16.msra.mxu1 %v2309_v9 }
0x123b   :  { %1837 = vmatpush.bf16.msra.mxu1 %v2305_v52 }
0x128a   :  { %v1770_v53 = vpop.permute.xlu2 %1769 }
0x128b   :  { %v1772_v40 = vmul.f32 %v1770_v53, %v1763_v48 }
0x128d   :  { %1774 = vrot.lane.b32.xlu1 %v1772_v40, %s2553_s15 }
0x12a1   :  { %v1732_v47 = vpop.permute.xlu1 %1731 }
0x12a2   :  { %v1734_v6 = vmul.f32 %v1732_v47, %v1725_v62 }
0x12a4   :  { %1736 = vrot.lane.b32.xlu0 %v1734_v6, %s2553_s15 }
0x12ff   :  { %v1775_v50 = vpop.permute.xlu1 %1774 }
0x1300   :  { %v1777_v55 = vadd.f32 %v1775_v50, %v1767_v3 }
0x1302   :  { %2513 = vtanh.f32 %v1777_v55 }
0x1308   :  { %v2514_v57 = vpop.eup %2513 }
0x1309   :  { %1780 = vrot.lane.b32.xlu0 %v2514_v57, %s2552_s2 }
0x1316   :  { %v1737_v14 = vpop.permute.xlu0 %1736 }
0x1317   :  { %v1739_v60 = vadd.f32 %v1737_v14, %v1729_v58 }
0x1319   :  { %2515 = vtanh.f32 %v1739_v60 }
0x131f   :  { %v2516_v11 = vpop.eup %2515 }
0x1320   :  { %1742 = vrot.lane.b32.xlu2 %v2516_v11, %s2552_s2 }
0x137a   :  { %v1743_v61 = vpop.permute.xlu2 %1742 }
0x137b   :  { %v1745_v0 = vmul.f32 %v1743_v61, %v1725_v62  ;;  %v1781_v45 = vpop.permute.xlu0 %1780 }
0x137c   :  { %v1783_v63 = vmul.f32 %v1781_v45, %v1763_v48 }
0x137d   :  { %1785 = vrot.lane.b32.xlu1 %v1745_v0, %s2553_s15 }
0x137e   :  { %1789 = vrot.lane.b32.xlu2 %v1783_v63, %s2552_s2 }
0x13d8   :  { %v1790_v18 = vpop.permute.xlu2 %1789 }
0x13ef   :  { %v1786_v22 = vpop.permute.xlu1 %1785 }
0x13f0   :  { %v1792_v19 = vsel %vm117_vm0, %v1786_v22, %v1790_v18 }
0x13f1   :  { %v1793_v20 = vpack.c.bf16 %v1792_v19, %v1792_v19 }
0x13f3   :  { %2318 = vmatmul.msk.bf16.vlgmr.msra.gmra.mxu1 %vm390_vm2, %v1793_v20 }
0x1470   :  { %v1839_v25 = vpop.f32.mrf.mxu1 }
0x1471   :  { %v1843_v13 = vadd.f32 %v1839_v25, %v2896_v12 }
0x1473   :  { %v1848_v27 = vadd.f32 %v2418_v21, %v1843_v13 }
0x1475   :  { %v1849_v30 = vmax.f32 %v1848_v27, 0.0 }
0x1477   :  { %v1854_v41 = vmul.f32 %v2419_v28, %v1849_v30 }
0x1478   :  { %v1841_v34 = vpop.f32.mrf.mxu1 }
0x1479   :  { %v1855_v38 = vsel %vm117_vm0, %v1854_v41, 0.0 }
0x147a   :  { %1856 = vadd.xlane.f32.xlu0 %v1855_v38 }
0x14ed   :  { %v1857_v31 = vpop.xlane.xlu0 %1856 }
0x14ee   :  { %v1862_v32 = vadd.f32 %v2420_v16, %v1857_v31 }
0x14f0   :  { %v2319_v54 = vmul.f32 -1.442695, %v1862_v32 }
0x14f2   :  { %2517 = vpow2.f32 %v2319_v54 }
0x14f8   :  { %v2518_v43 = vpop.eup %2517 }
0x14f9   :  { %v1866_v39 = vadd.f32 1.0, %v2518_v43 }
0x14fb   :  { %2519 = vrcp.f32 %v1866_v39  ;;  %v1878_v59 = vand.u32 2147483648, %v1866_v39  ;;  %v1876_v33 = vand.u32 2147483647, %v1866_v39  ;;  %vm1872_vm3 = vweird.f32 %v1866_v39 }
0x14fd   :  { %v1879_v29 = vor.u32 1.1754944e-38, %v1878_v59  ;;  %vm1877_vm5 = vcmp.eq.f32.partialorder %v1876_v33, 8.507059e+37 }
0x1501   :  { %v2520_v12 = vpop.eup %2519 }
0x1502   :  { %v1868_v35 = vmul.f32 %v2520_v12, %v1866_v39  ;;  %vm1873_vm2 = vweird.f32 %v2520_v12 }
0x1503   :  { %vm1874_vm0 = vmor %vm1872_vm3, %vm1873_vm2 }
0x1504   :  { %v1869_v36 = vsub.f32 1.0, %v1868_v35 }
0x1506   :  { %v1870_v5 = vmul.f32 %v2520_v12, %v1869_v36 }
0x1508   :  { %v1871_v37 = vadd.f32 %v2520_v12, %v1870_v5 }
0x150a   :  { %v1875_v42 = vsel %vm1874_vm0, %v2520_v12, %v1871_v37 }
0x150b   :  { %v1880_v46 = vsel %vm1877_vm5, %v1879_v29, %v1875_v42 }
0x150c   :  { %1883 = vst.msk [vmem:[%s2931_s7] sm:$0xff] %vm1882_vm4, %v1880_v46 }
0x150d   :  { %1888 = vsyncpa [#allocation4], 1 }

</bundles_post_ra>
